<compile_context>
chip_gen: v7x
topology: tpu7x:2x2x1
jax: 0.10.0
libtpu: 0.0.40
codegen_flags: <defaults>
</compile_context>

<pallas_src>
import jax
import jax.numpy as jnp
from jax import lax
from jax.experimental import pallas as pl
from jax.experimental.pallas import tpu as pltpu


def _round_up(x, m):
    return (x + m - 1) // m * m


# ----------------------------------------------------------------------------
# Pallas kernel: one grid step == T_BLK decoder time steps for one batch block
# ----------------------------------------------------------------------------
def decoder_block_kernel(emb_ref,        # (T_BLK, B_BLK, H)  relu'd later
                         xz_ref,         # (B_BLK, 3H)  z @ Wx_z + b_ih   (loop-invariant)
                         h0_ref,         # (B_BLK, H)   z2h(z)
                         outz_ref,       # (B_BLK, Vp)  z @ Wout_z + b_out (loop-invariant)
                         wx_ref,         # (H, 3H)      fused [W_ir|W_iz|W_in] (emb half)
                         wh_ref,         # (H, 3H)      fused [W_hr|W_hz|W_hn]
                         bh_ref,         # (1, 3H)
                         wout_ref,       # (H, Vp)
                         out_ref,        # (T_BLK, B_BLK, Vp)
                         h_ref):         # VMEM scratch (B_BLK, H): hidden carried over blocks
    H = h0_ref.shape[-1]

    # hidden = z2h(z) at the start of each batch block's time loop.
    @pl.when(pl.program_id(1) == 0)
    def _():
        h_ref[...] = h0_ref[...]

    # Loop-invariant operands, loaded once per grid block.
    xz = xz_ref[...]
    outz = outz_ref[...]
    wx = wx_ref[...]
    wh = wh_ref[...]
    bh = bh_ref[...]
    wout = wout_ref[...]

    def step(t, h):
        # step(): x = relu(embed(tok)); the cat([x, z]) matmul is split so the
        # z part (xz) is reused instead of recomputed/concatenated every step.
        x = jnp.maximum(emb_ref[t], 0.0)                                   # (B, H)
        gx = jnp.dot(x, wx, preferred_element_type=jnp.float32) + xz      # (B, 3H)
        gh = jnp.dot(h, wh, preferred_element_type=jnp.float32) + bh      # (B, 3H)
        # PyTorch GRU cell (gate order r, z, n):
        r = jax.nn.sigmoid(gx[:, :H] + gh[:, :H])
        u = jax.nn.sigmoid(gx[:, H:2 * H] + gh[:, H:2 * H])
        n = jnp.tanh(gx[:, 2 * H:] + r * gh[:, 2 * H:])
        h_new = (1.0 - u) * n + u * h
        # output = out(cat([gru_out, z])); the z half is precomputed in outz.
        out_ref[t] = (jnp.dot(h_new, wout, preferred_element_type=jnp.float32)
                      + outz)
        return h_new

    h_final = lax.fori_loop(0, emb_ref.shape[0], step, h_ref[...], unroll=True)
    h_ref[...] = h_final


# ----------------------------------------------------------------------------
# Wrapper
# ----------------------------------------------------------------------------
def decoder_forward_pallas(z, inputs, params, sos_token=0, t_blk=8, b_blk=8):
    n_steps, B = inputs.shape
    Z = z.shape[1]
    V, H = params["embed"].shape
    p = params

    T_pad = _round_up(n_steps, t_blk)
    B_pad = _round_up(B, b_blk)        # sublane tile (8 for f32)
    V_pad = _round_up(V, 128)          # lane-dense output stores

    # Teacher-forcing token stream: SOS at step 0, then inputs[i-1].
    tok = jnp.concatenate(
        [jnp.full((1, B), sos_token, dtype=jnp.int32),
         inputs[:-1].astype(jnp.int32)], axis=0)
    tok = jnp.pad(tok, ((0, T_pad - n_steps), (0, B_pad - B)))
    emb = p["embed"][tok]                                # (T_pad, B_pad, H) gather = glue

    z_p = jnp.pad(z, ((0, B_pad - B), (0, 0)))           # (B_pad, Z)

    # Fuse the three GRU gate matrices (r, z, n order, matching PyTorch).
    wx = jnp.concatenate([p["wxr"], p["wxz"], p["wxn"]], axis=1)   # (H+Z, 3H)
    wh = jnp.concatenate([p["whr"], p["whz"], p["whn"]], axis=1)   # (H, 3H)
    bx = jnp.concatenate([p["bxr"], p["bxz"], p["bxn"]], axis=1)   # (1, 3H)
    bh = jnp.concatenate([p["bhr"], p["bhz"], p["bhn"]], axis=1)   # (1, 3H)
    wx_emb, wx_z = wx[:H], wx[H:]                                   # (H,3H), (Z,3H)

    wout_h = jnp.pad(p["wout"][:H], ((0, 0), (0, V_pad - V)))       # (H, V_pad)
    wout_z = jnp.pad(p["wout"][H:], ((0, 0), (0, V_pad - V)))       # (Z, V_pad)
    bout = jnp.pad(p["bout"], ((0, 0), (0, V_pad - V)))             # (1, V_pad)

    # Loop-invariant z contributions + initial hidden, hoisted out of the recurrence.
    xz = z_p @ wx_z + bx                  # (B_pad, 3H)
    outz = z_p @ wout_z + bout            # (B_pad, V_pad)
    h0 = z_p @ p["wz2h"] + p["bz2h"]      # (B_pad, H)

    def fullspec(a):
        nd = a.ndim
        return pl.BlockSpec(a.shape, lambda b, t, _nd=nd: (0,) * _nd)

    grid = (B_pad // b_blk, T_pad // t_blk)

    grid_spec = pltpu.PrefetchScalarGridSpec(
        num_scalar_prefetch=0,
        grid=grid,
        in_specs=[
            pl.BlockSpec((t_blk, b_blk, H), lambda b, t: (t, b, 0)),   # emb
            pl.BlockSpec((b_blk, 3 * H), lambda b, t: (b, 0)),         # xz
            pl.BlockSpec((b_blk, H), lambda b, t: (b, 0)),             # h0
            pl.BlockSpec((b_blk, V_pad), lambda b, t: (b, 0)),         # outz
            fullspec(wx_emb), fullspec(wh), fullspec(bh), fullspec(wout_h),
        ],
        out_specs=pl.BlockSpec((t_blk, b_blk, V_pad), lambda b, t: (t, b, 0)),
        scratch_shapes=[pltpu.VMEM((b_blk, H), jnp.float32)],
    )

    outputs = pl.pallas_call(
        decoder_block_kernel,
        out_shape=jax.ShapeDtypeStruct((T_pad, B_pad, V_pad), jnp.float32),
        grid_spec=grid_spec,
        compiler_params=pltpu.CompilerParams(
            # batch blocks independent (megacore-shardable on v7x);
            # time axis carries the hidden state -> sequential.
            dimension_semantics=("parallel", "arbitrary")),
    )(emb, xz, h0, outz, wx_emb, wh, bh, wout_h)

    return jnp.transpose(outputs[:n_steps, :B, :V], (1, 0, 2))       # (B, n_steps, V)


# ----------------------------------------------------------------------------
# Pure-JAX reference (same math, unfused) for validation
# ----------------------------------------------------------------------------
def decoder_forward_ref(z, inputs, params, sos_token=0):
    n_steps, B = inputs.shape
    p = params
    tok = jnp.concatenate(
        [jnp.full((1, B), sos_token, dtype=jnp.int32), inputs[:-1]], axis=0)
    emb = p["embed"][tok]
    h = z @ p["wz2h"] + p["bz2h"]
    outs = []
    for i in range(n_steps):
        x = jnp.concatenate([jnp.maximum(emb[i], 0.0), z], axis=1)
        r = jax.nn.sigmoid(x @ p["wxr"] + p["bxr"] + h @ p["whr"] + p["bhr"])
        u = jax.nn.sigmoid(x @ p["wxz"] + p["bxz"] + h @ p["whz"] + p["bhz"])
        n = jnp.tanh(x @ p["wxn"] + p["bxn"] + r * (h @ p["whn"] + p["bhn"]))
        h = (1.0 - u) * n + u * h
        o = jnp.concatenate([h, z], axis=1) @ p["wout"] + p["bout"]
        outs.append(o)
    return jnp.transpose(jnp.stack(outs, axis=0), (1, 0, 2))


# ----------------------------------------------------------------------------
# Deterministic parameter init (shapes follow DecoderRNN.__init__, n_layers=1)
# ----------------------------------------------------------------------------
def init_params(key, input_size, hidden_size, output_size):
    Z, H, V = input_size, hidden_size, output_size
    names_shapes = [
        ("embed", (V, H)),          # nn.Embedding(output_size, hidden_size)
        ("wz2h", (Z, H)),           # nn.Linear(input_size, hidden_size), pre-transposed
        ("bz2h", (1, H)),
        ("wxr", (H + Z, H)), ("wxz", (H + Z, H)), ("wxn", (H + Z, H)),  # GRU W_ih (split r,z,n)
        ("bxr", (1, H)), ("bxz", (1, H)), ("bxn", (1, H)),
        ("whr", (H, H)), ("whz", (H, H)), ("whn", (H, H)),              # GRU W_hh
        ("bhr", (1, H)), ("bhz", (1, H)), ("bhn", (1, H)),
        ("wout", (H + Z, V)),       # nn.Linear(hidden_size + input_size, output_size)
        ("bout", (1, V)),
    ]
    keys = jax.random.split(key, len(names_shapes))
    return {name: (0.1 * jax.random.normal(k, shape, jnp.float32))
            for (name, shape), k in zip(names_shapes, keys)}


if __name__ == "__main__":
    B, Z, H, V, n_steps = 2, 16, 32, 48, 20
    key = jax.random.PRNGKey(0)
    kp, kz, kt = jax.random.split(key, 3)

    params = init_params(kp, input_size=Z, hidden_size=H, output_size=V)
    z = jax.random.normal(kz, (B, Z), jnp.float32)
    inputs = jax.random.randint(kt, (n_steps, B), 0, V, dtype=jnp.int32)

    out = decoder_forward_pallas(z, inputs, params, sos_token=0)
    out = jax.block_until_ready(out)

    ref = decoder_forward_ref(z, inputs, params, sos_token=0)
    assert out.shape == (B, n_steps, V), out.shape
    assert jnp.allclose(out, ref, atol=1e-4, rtol=1e-4), float(jnp.max(jnp.abs(out - ref)))

    print("KERNEL_OK")
</pallas_src>

<mosaic_0001>
module attributes {stable_mosaic.version = 11 : i64} {
  func.func @decoder_block_kernel(%arg0: i32, %arg1: i32, %arg2: memref<8x8x32xf32, #tpu.memory_space<vmem>>, %arg3: memref<8x96xf32, #tpu.memory_space<vmem>>, %arg4: memref<8x32xf32, #tpu.memory_space<vmem>>, %arg5: memref<8x128xf32, #tpu.memory_space<vmem>>, %arg6: memref<32x96xf32, #tpu.memory_space<vmem>>, %arg7: memref<32x96xf32, #tpu.memory_space<vmem>>, %arg8: memref<1x96xf32, #tpu.memory_space<vmem>>, %arg9: memref<32x128xf32, #tpu.memory_space<vmem>>, %arg10: memref<8x8x128xf32, #tpu.memory_space<vmem>>, %arg11: memref<8x32xf32, #tpu.memory_space<vmem>>) attributes {dimension_semantics = [#tpu.dimension_semantics<parallel>, #tpu.dimension_semantics<arbitrary>], iteration_bounds = array<i64: 1, 3>, scalar_prefetch = 0 : i64, scratch_operands = 1 : i64, tpu.core_type = #tpu.core_type<tc>, window_params = [{transform_indices = @transform_0, window_bounds = array<i64: 8, 8, 32>}, {transform_indices = @transform_1, window_bounds = array<i64: 8, 96>}, {transform_indices = @transform_2, window_bounds = array<i64: 8, 32>}, {transform_indices = @transform_3, window_bounds = array<i64: 8, 128>}, {pipeline_mode = #tpu.pipeline_mode<synchronous>, transform_indices = @transform_4, window_bounds = array<i64: 32, 96>}, {pipeline_mode = #tpu.pipeline_mode<synchronous>, transform_indices = @transform_5, window_bounds = array<i64: 32, 96>}, {pipeline_mode = #tpu.pipeline_mode<synchronous>, transform_indices = @transform_6, window_bounds = array<i64: 1, 96>}, {pipeline_mode = #tpu.pipeline_mode<synchronous>, transform_indices = @transform_7, window_bounds = array<i64: 32, 128>}, {transform_indices = @transform_8, window_bounds = array<i64: 8, 8, 128>}]} {
    %c0_i32 = arith.constant 0 : i32
    %0 = arith.cmpi eq, %arg1, %c0_i32 : i32
    %1 = arith.extui %0 : i1 to i32
    %c0_i32_0 = arith.constant 0 : i32
    %2 = arith.cmpi ne, %1, %c0_i32_0 : i32
    scf.if %2 {
      %c0_104 = arith.constant 0 : index
      %c0_105 = arith.constant 0 : index
      %347 = vector.load %arg4[%c0_104, %c0_105] : memref<8x32xf32, #tpu.memory_space<vmem>>, vector<8x32xf32>
      %c0_106 = arith.constant 0 : index
      %c0_107 = arith.constant 0 : index
      %348 = vector.load %arg11[%c0_106, %c0_107] : memref<8x32xf32, #tpu.memory_space<vmem>>, vector<8x32xf32>
      tpu.vector_store %arg11[%c0_106, %c0_107], %347 {strides = array<i32>} : memref<8x32xf32, #tpu.memory_space<vmem>>, vector<8x32xf32>,
    } else {
    }
    %c0 = arith.constant 0 : index
    %c0_1 = arith.constant 0 : index
    %3 = vector.load %arg3[%c0, %c0_1] : memref<8x96xf32, #tpu.memory_space<vmem>>, vector<8x96xf32>
    %c0_2 = arith.constant 0 : index
    %c0_3 = arith.constant 0 : index
    %4 = vector.load %arg5[%c0_2, %c0_3] : memref<8x128xf32, #tpu.memory_space<vmem>>, vector<8x128xf32>
    %c0_4 = arith.constant 0 : index
    %c0_5 = arith.constant 0 : index
    %5 = vector.load %arg6[%c0_4, %c0_5] : memref<32x96xf32, #tpu.memory_space<vmem>>, vector<32x96xf32>
    %c0_6 = arith.constant 0 : index
    %c0_7 = arith.constant 0 : index
    %6 = vector.load %arg7[%c0_6, %c0_7] : memref<32x96xf32, #tpu.memory_space<vmem>>, vector<32x96xf32>
    %c0_8 = arith.constant 0 : index
    %c0_9 = arith.constant 0 : index
    %7 = vector.load %arg8[%c0_8, %c0_9] : memref<1x96xf32, #tpu.memory_space<vmem>>, vector<1x96xf32>
    %c0_10 = arith.constant 0 : index
    %c0_11 = arith.constant 0 : index
    %8 = vector.load %arg9[%c0_10, %c0_11] : memref<32x128xf32, #tpu.memory_space<vmem>>, vector<32x128xf32>
    %c0_12 = arith.constant 0 : index
    %c0_13 = arith.constant 0 : index
    %9 = vector.load %arg11[%c0_12, %c0_13] : memref<8x32xf32, #tpu.memory_space<vmem>>, vector<8x32xf32>
    %c0_i32_14 = arith.constant 0 : i32
    %10 = arith.index_cast %c0_i32_14 : i32 to index
    %c0_15 = arith.constant 0 : index
    %c0_16 = arith.constant 0 : index
    %11 = vector.load %arg2[%10, %c0_15, %c0_16] : memref<8x8x32xf32, #tpu.memory_space<vmem>>, vector<1x8x32xf32>
    %12 = vector.shape_cast %11 : vector<1x8x32xf32> to vector<8x32xf32>
    %cst = arith.constant 0.000000e+00 : f32
    %13 = vector.broadcast %cst : f32 to vector<8x32xf32>
    %14 = arith.maximumf %12, %13 : vector<8x32xf32>
    %cst_17 = arith.constant dense<0.000000e+00> : vector<8x96xf32>
    %15 = tpu.matmul %14, %5, %cst_17 {dimension_numbers = #tpu.dot_dimension_numbers<[1], [0], [0], [1], [0, 0, 1, 1], [], []>} : vector<8x32xf32>, vector<32x96xf32>, vector<8x96xf32> -> vector<8x96xf32>
    %16 = arith.addf %15, %3 : vector<8x96xf32>
    %cst_18 = arith.constant dense<0.000000e+00> : vector<8x96xf32>
    %17 = tpu.matmul %9, %6, %cst_18 {dimension_numbers = #tpu.dot_dimension_numbers<[1], [0], [0], [1], [0, 0, 1, 1], [], []>} : vector<8x32xf32>, vector<32x96xf32>, vector<8x96xf32> -> vector<8x96xf32>
    %18 = vector.broadcast %7 : vector<1x96xf32> to vector<8x96xf32>
    %19 = arith.addf %17, %18 : vector<8x96xf32>
    %20 = vector.extract_strided_slice %16 {offsets = [0, 0], sizes = [8, 32], strides = [1, 1]} : vector<8x96xf32> to vector<8x32xf32>
    %21 = vector.extract_strided_slice %19 {offsets = [0, 0], sizes = [8, 32], strides = [1, 1]} : vector<8x96xf32> to vector<8x32xf32>
    %22 = arith.addf %20, %21 : vector<8x32xf32>
    %23 = arith.negf %22 : vector<8x32xf32>
    %24 = math.exp %23 : vector<8x32xf32>
    %cst_19 = arith.constant 1.000000e+00 : f32
    %25 = vector.broadcast %cst_19 : f32 to vector<8x32xf32>
    %26 = arith.addf %25, %24 : vector<8x32xf32>
    %27 = arith.divf %25, %26 : vector<8x32xf32>
    %28 = vector.extract_strided_slice %16 {offsets = [0, 32], sizes = [8, 32], strides = [1, 1]} : vector<8x96xf32> to vector<8x32xf32>
    %29 = vector.extract_strided_slice %19 {offsets = [0, 32], sizes = [8, 32], strides = [1, 1]} : vector<8x96xf32> to vector<8x32xf32>
    %30 = arith.addf %28, %29 : vector<8x32xf32>
    %31 = arith.negf %30 : vector<8x32xf32>
    %32 = math.exp %31 : vector<8x32xf32>
    %cst_20 = arith.constant 1.000000e+00 : f32
    %33 = vector.broadcast %cst_20 : f32 to vector<8x32xf32>
    %34 = arith.addf %33, %32 : vector<8x32xf32>
    %35 = arith.divf %33, %34 : vector<8x32xf32>
    %36 = vector.extract_strided_slice %16 {offsets = [0, 64], sizes = [8, 32], strides = [1, 1]} : vector<8x96xf32> to vector<8x32xf32>
    %37 = vector.extract_strided_slice %19 {offsets = [0, 64], sizes = [8, 32], strides = [1, 1]} : vector<8x96xf32> to vector<8x32xf32>
    %38 = arith.mulf %27, %37 : vector<8x32xf32>
    %39 = arith.addf %36, %38 : vector<8x32xf32>
    %40 = math.tanh %39 : vector<8x32xf32>
    %cst_21 = arith.constant 1.000000e+00 : f32
    %41 = vector.broadcast %cst_21 : f32 to vector<8x32xf32>
    %42 = arith.subf %41, %35 : vector<8x32xf32>
    %43 = arith.mulf %42, %40 : vector<8x32xf32>
    %44 = arith.mulf %35, %9 : vector<8x32xf32>
    %45 = arith.addf %43, %44 : vector<8x32xf32>
    %cst_22 = arith.constant dense<0.000000e+00> : vector<8x128xf32>
    %46 = tpu.matmul %45, %8, %cst_22 {dimension_numbers = #tpu.dot_dimension_numbers<[1], [0], [0], [1], [0, 0, 1, 1], [], []>} : vector<8x32xf32>, vector<32x128xf32>, vector<8x128xf32> -> vector<8x128xf32>
    %47 = arith.addf %46, %4 : vector<8x128xf32>
    %48 = arith.index_cast %c0_i32_14 : i32 to index
    %c0_23 = arith.constant 0 : index
    %c0_24 = arith.constant 0 : index
    %49 = vector.load %arg10[%48, %c0_23, %c0_24] : memref<8x8x128xf32, #tpu.memory_space<vmem>>, vector<1x8x128xf32>
    %50 = vector.shape_cast %49 : vector<1x8x128xf32> to vector<8x128xf32>
    %51 = vector.shape_cast %47 : vector<8x128xf32> to vector<1x8x128xf32>
    tpu.vector_store %arg10[%48, %c0_23, %c0_24], %51 {strides = array<i32>} : memref<8x8x128xf32, #tpu.memory_space<vmem>>, vector<1x8x128xf32>,
    %c1_i32 = arith.constant 1 : i32
    %52 = arith.index_cast %c1_i32 : i32 to index
    %c0_25 = arith.constant 0 : index
    %c0_26 = arith.constant 0 : index
    %53 = vector.load %arg2[%52, %c0_25, %c0_26] : memref<8x8x32xf32, #tpu.memory_space<vmem>>, vector<1x8x32xf32>
    %54 = vector.shape_cast %53 : vector<1x8x32xf32> to vector<8x32xf32>
    %cst_27 = arith.constant 0.000000e+00 : f32
    %55 = vector.broadcast %cst_27 : f32 to vector<8x32xf32>
    %56 = arith.maximumf %54, %55 : vector<8x32xf32>
    %cst_28 = arith.constant dense<0.000000e+00> : vector<8x96xf32>
    %57 = tpu.matmul %56, %5, %cst_28 {dimension_numbers = #tpu.dot_dimension_numbers<[1], [0], [0], [1], [0, 0, 1, 1], [], []>} : vector<8x32xf32>, vector<32x96xf32>, vector<8x96xf32> -> vector<8x96xf32>
    %58 = arith.addf %57, %3 : vector<8x96xf32>
    %cst_29 = arith.constant dense<0.000000e+00> : vector<8x96xf32>
    %59 = tpu.matmul %45, %6, %cst_29 {dimension_numbers = #tpu.dot_dimension_numbers<[1], [0], [0], [1], [0, 0, 1, 1], [], []>} : vector<8x32xf32>, vector<32x96xf32>, vector<8x96xf32> -> vector<8x96xf32>
    %60 = vector.broadcast %7 : vector<1x96xf32> to vector<8x96xf32>
    %61 = arith.addf %59, %60 : vector<8x96xf32>
    %62 = vector.extract_strided_slice %58 {offsets = [0, 0], sizes = [8, 32], strides = [1, 1]} : vector<8x96xf32> to vector<8x32xf32>
    %63 = vector.extract_strided_slice %61 {offsets = [0, 0], sizes = [8, 32], strides = [1, 1]} : vector<8x96xf32> to vector<8x32xf32>
    %64 = arith.addf %62, %63 : vector<8x32xf32>
    %65 = arith.negf %64 : vector<8x32xf32>
    %66 = math.exp %65 : vector<8x32xf32>
    %cst_30 = arith.constant 1.000000e+00 : f32
    %67 = vector.broadcast %cst_30 : f32 to vector<8x32xf32>
    %68 = arith.addf %67, %66 : vector<8x32xf32>
    %69 = arith.divf %67, %68 : vector<8x32xf32>
    %70 = vector.extract_strided_slice %58 {offsets = [0, 32], sizes = [8, 32], strides = [1, 1]} : vector<8x96xf32> to vector<8x32xf32>
    %71 = vector.extract_strided_slice %61 {offsets = [0, 32], sizes = [8, 32], strides = [1, 1]} : vector<8x96xf32> to vector<8x32xf32>
    %72 = arith.addf %70, %71 : vector<8x32xf32>
    %73 = arith.negf %72 : vector<8x32xf32>
    %74 = math.exp %73 : vector<8x32xf32>
    %cst_31 = arith.constant 1.000000e+00 : f32
    %75 = vector.broadcast %cst_31 : f32 to vector<8x32xf32>
    %76 = arith.addf %75, %74 : vector<8x32xf32>
    %77 = arith.divf %75, %76 : vector<8x32xf32>
    %78 = vector.extract_strided_slice %58 {offsets = [0, 64], sizes = [8, 32], strides = [1, 1]} : vector<8x96xf32> to vector<8x32xf32>
    %79 = vector.extract_strided_slice %61 {offsets = [0, 64], sizes = [8, 32], strides = [1, 1]} : vector<8x96xf32> to vector<8x32xf32>
    %80 = arith.mulf %69, %79 : vector<8x32xf32>
    %81 = arith.addf %78, %80 : vector<8x32xf32>
    %82 = math.tanh %81 : vector<8x32xf32>
    %cst_32 = arith.constant 1.000000e+00 : f32
    %83 = vector.broadcast %cst_32 : f32 to vector<8x32xf32>
    %84 = arith.subf %83, %77 : vector<8x32xf32>
    %85 = arith.mulf %84, %82 : vector<8x32xf32>
    %86 = arith.mulf %77, %45 : vector<8x32xf32>
    %87 = arith.addf %85, %86 : vector<8x32xf32>
    %cst_33 = arith.constant dense<0.000000e+00> : vector<8x128xf32>
    %88 = tpu.matmul %87, %8, %cst_33 {dimension_numbers = #tpu.dot_dimension_numbers<[1], [0], [0], [1], [0, 0, 1, 1], [], []>} : vector<8x32xf32>, vector<32x128xf32>, vector<8x128xf32> -> vector<8x128xf32>
    %89 = arith.addf %88, %4 : vector<8x128xf32>
    %90 = arith.index_cast %c1_i32 : i32 to index
    %c0_34 = arith.constant 0 : index
    %c0_35 = arith.constant 0 : index
    %91 = vector.load %arg10[%90, %c0_34, %c0_35] : memref<8x8x128xf32, #tpu.memory_space<vmem>>, vector<1x8x128xf32>
    %92 = vector.shape_cast %91 : vector<1x8x128xf32> to vector<8x128xf32>
    %93 = vector.shape_cast %89 : vector<8x128xf32> to vector<1x8x128xf32>
    tpu.vector_store %arg10[%90, %c0_34, %c0_35], %93 {strides = array<i32>} : memref<8x8x128xf32, #tpu.memory_space<vmem>>, vector<1x8x128xf32>,
    %c2_i32 = arith.constant 2 : i32
    %94 = arith.index_cast %c2_i32 : i32 to index
    %c0_36 = arith.constant 0 : index
    %c0_37 = arith.constant 0 : index
    %95 = vector.load %arg2[%94, %c0_36, %c0_37] : memref<8x8x32xf32, #tpu.memory_space<vmem>>, vector<1x8x32xf32>
    %96 = vector.shape_cast %95 : vector<1x8x32xf32> to vector<8x32xf32>
    %cst_38 = arith.constant 0.000000e+00 : f32
    %97 = vector.broadcast %cst_38 : f32 to vector<8x32xf32>
    %98 = arith.maximumf %96, %97 : vector<8x32xf32>
    %cst_39 = arith.constant dense<0.000000e+00> : vector<8x96xf32>
    %99 = tpu.matmul %98, %5, %cst_39 {dimension_numbers = #tpu.dot_dimension_numbers<[1], [0], [0], [1], [0, 0, 1, 1], [], []>} : vector<8x32xf32>, vector<32x96xf32>, vector<8x96xf32> -> vector<8x96xf32>
    %100 = arith.addf %99, %3 : vector<8x96xf32>
    %cst_40 = arith.constant dense<0.000000e+00> : vector<8x96xf32>
    %101 = tpu.matmul %87, %6, %cst_40 {dimension_numbers = #tpu.dot_dimension_numbers<[1], [0], [0], [1], [0, 0, 1, 1], [], []>} : vector<8x32xf32>, vector<32x96xf32>, vector<8x96xf32> -> vector<8x96xf32>
    %102 = vector.broadcast %7 : vector<1x96xf32> to vector<8x96xf32>
    %103 = arith.addf %101, %102 : vector<8x96xf32>
    %104 = vector.extract_strided_slice %100 {offsets = [0, 0], sizes = [8, 32], strides = [1, 1]} : vector<8x96xf32> to vector<8x32xf32>
    %105 = vector.extract_strided_slice %103 {offsets = [0, 0], sizes = [8, 32], strides = [1, 1]} : vector<8x96xf32> to vector<8x32xf32>
    %106 = arith.addf %104, %105 : vector<8x32xf32>
    %107 = arith.negf %106 : vector<8x32xf32>
    %108 = math.exp %107 : vector<8x32xf32>
    %cst_41 = arith.constant 1.000000e+00 : f32
    %109 = vector.broadcast %cst_41 : f32 to vector<8x32xf32>
    %110 = arith.addf %109, %108 : vector<8x32xf32>
    %111 = arith.divf %109, %110 : vector<8x32xf32>
    %112 = vector.extract_strided_slice %100 {offsets = [0, 32], sizes = [8, 32], strides = [1, 1]} : vector<8x96xf32> to vector<8x32xf32>
    %113 = vector.extract_strided_slice %103 {offsets = [0, 32], sizes = [8, 32], strides = [1, 1]} : vector<8x96xf32> to vector<8x32xf32>
    %114 = arith.addf %112, %113 : vector<8x32xf32>
    %115 = arith.negf %114 : vector<8x32xf32>
    %116 = math.exp %115 : vector<8x32xf32>
    %cst_42 = arith.constant 1.000000e+00 : f32
    %117 = vector.broadcast %cst_42 : f32 to vector<8x32xf32>
    %118 = arith.addf %117, %116 : vector<8x32xf32>
    %119 = arith.divf %117, %118 : vector<8x32xf32>
    %120 = vector.extract_strided_slice %100 {offsets = [0, 64], sizes = [8, 32], strides = [1, 1]} : vector<8x96xf32> to vector<8x32xf32>
    %121 = vector.extract_strided_slice %103 {offsets = [0, 64], sizes = [8, 32], strides = [1, 1]} : vector<8x96xf32> to vector<8x32xf32>
    %122 = arith.mulf %111, %121 : vector<8x32xf32>
    %123 = arith.addf %120, %122 : vector<8x32xf32>
    %124 = math.tanh %123 : vector<8x32xf32>
    %cst_43 = arith.constant 1.000000e+00 : f32
    %125 = vector.broadcast %cst_43 : f32 to vector<8x32xf32>
    %126 = arith.subf %125, %119 : vector<8x32xf32>
    %127 = arith.mulf %126, %124 : vector<8x32xf32>
    %128 = arith.mulf %119, %87 : vector<8x32xf32>
    %129 = arith.addf %127, %128 : vector<8x32xf32>
    %cst_44 = arith.constant dense<0.000000e+00> : vector<8x128xf32>
    %130 = tpu.matmul %129, %8, %cst_44 {dimension_numbers = #tpu.dot_dimension_numbers<[1], [0], [0], [1], [0, 0, 1, 1], [], []>} : vector<8x32xf32>, vector<32x128xf32>, vector<8x128xf32> -> vector<8x128xf32>
    %131 = arith.addf %130, %4 : vector<8x128xf32>
    %132 = arith.index_cast %c2_i32 : i32 to index
    %c0_45 = arith.constant 0 : index
    %c0_46 = arith.constant 0 : index
    %133 = vector.load %arg10[%132, %c0_45, %c0_46] : memref<8x8x128xf32, #tpu.memory_space<vmem>>, vector<1x8x128xf32>
    %134 = vector.shape_cast %133 : vector<1x8x128xf32> to vector<8x128xf32>
    %135 = vector.shape_cast %131 : vector<8x128xf32> to vector<1x8x128xf32>
    tpu.vector_store %arg10[%132, %c0_45, %c0_46], %135 {strides = array<i32>} : memref<8x8x128xf32, #tpu.memory_space<vmem>>, vector<1x8x128xf32>,
    %c3_i32 = arith.constant 3 : i32
    %136 = arith.index_cast %c3_i32 : i32 to index
    %c0_47 = arith.constant 0 : index
    %c0_48 = arith.constant 0 : index
    %137 = vector.load %arg2[%136, %c0_47, %c0_48] : memref<8x8x32xf32, #tpu.memory_space<vmem>>, vector<1x8x32xf32>
    %138 = vector.shape_cast %137 : vector<1x8x32xf32> to vector<8x32xf32>
    %cst_49 = arith.constant 0.000000e+00 : f32
    %139 = vector.broadcast %cst_49 : f32 to vector<8x32xf32>
    %140 = arith.maximumf %138, %139 : vector<8x32xf32>
    %cst_50 = arith.constant dense<0.000000e+00> : vector<8x96xf32>
    %141 = tpu.matmul %140, %5, %cst_50 {dimension_numbers = #tpu.dot_dimension_numbers<[1], [0], [0], [1], [0, 0, 1, 1], [], []>} : vector<8x32xf32>, vector<32x96xf32>, vector<8x96xf32> -> vector<8x96xf32>
    %142 = arith.addf %141, %3 : vector<8x96xf32>
    %cst_51 = arith.constant dense<0.000000e+00> : vector<8x96xf32>
    %143 = tpu.matmul %129, %6, %cst_51 {dimension_numbers = #tpu.dot_dimension_numbers<[1], [0], [0], [1], [0, 0, 1, 1], [], []>} : vector<8x32xf32>, vector<32x96xf32>, vector<8x96xf32> -> vector<8x96xf32>
    %144 = vector.broadcast %7 : vector<1x96xf32> to vector<8x96xf32>
    %145 = arith.addf %143, %144 : vector<8x96xf32>
    %146 = vector.extract_strided_slice %142 {offsets = [0, 0], sizes = [8, 32], strides = [1, 1]} : vector<8x96xf32> to vector<8x32xf32>
    %147 = vector.extract_strided_slice %145 {offsets = [0, 0], sizes = [8, 32], strides = [1, 1]} : vector<8x96xf32> to vector<8x32xf32>
    %148 = arith.addf %146, %147 : vector<8x32xf32>
    %149 = arith.negf %148 : vector<8x32xf32>
    %150 = math.exp %149 : vector<8x32xf32>
    %cst_52 = arith.constant 1.000000e+00 : f32
    %151 = vector.broadcast %cst_52 : f32 to vector<8x32xf32>
    %152 = arith.addf %151, %150 : vector<8x32xf32>
    %153 = arith.divf %151, %152 : vector<8x32xf32>
    %154 = vector.extract_strided_slice %142 {offsets = [0, 32], sizes = [8, 32], strides = [1, 1]} : vector<8x96xf32> to vector<8x32xf32>
    %155 = vector.extract_strided_slice %145 {offsets = [0, 32], sizes = [8, 32], strides = [1, 1]} : vector<8x96xf32> to vector<8x32xf32>
    %156 = arith.addf %154, %155 : vector<8x32xf32>
    %157 = arith.negf %156 : vector<8x32xf32>
    %158 = math.exp %157 : vector<8x32xf32>
    %cst_53 = arith.constant 1.000000e+00 : f32
    %159 = vector.broadcast %cst_53 : f32 to vector<8x32xf32>
    %160 = arith.addf %159, %158 : vector<8x32xf32>
    %161 = arith.divf %159, %160 : vector<8x32xf32>
    %162 = vector.extract_strided_slice %142 {offsets = [0, 64], sizes = [8, 32], strides = [1, 1]} : vector<8x96xf32> to vector<8x32xf32>
    %163 = vector.extract_strided_slice %145 {offsets = [0, 64], sizes = [8, 32], strides = [1, 1]} : vector<8x96xf32> to vector<8x32xf32>
    %164 = arith.mulf %153, %163 : vector<8x32xf32>
    %165 = arith.addf %162, %164 : vector<8x32xf32>
    %166 = math.tanh %165 : vector<8x32xf32>
    %cst_54 = arith.constant 1.000000e+00 : f32
    %167 = vector.broadcast %cst_54 : f32 to vector<8x32xf32>
    %168 = arith.subf %167, %161 : vector<8x32xf32>
    %169 = arith.mulf %168, %166 : vector<8x32xf32>
    %170 = arith.mulf %161, %129 : vector<8x32xf32>
    %171 = arith.addf %169, %170 : vector<8x32xf32>
    %cst_55 = arith.constant dense<0.000000e+00> : vector<8x128xf32>
    %172 = tpu.matmul %171, %8, %cst_55 {dimension_numbers = #tpu.dot_dimension_numbers<[1], [0], [0], [1], [0, 0, 1, 1], [], []>} : vector<8x32xf32>, vector<32x128xf32>, vector<8x128xf32> -> vector<8x128xf32>
    %173 = arith.addf %172, %4 : vector<8x128xf32>
    %174 = arith.index_cast %c3_i32 : i32 to index
    %c0_56 = arith.constant 0 : index
    %c0_57 = arith.constant 0 : index
    %175 = vector.load %arg10[%174, %c0_56, %c0_57] : memref<8x8x128xf32, #tpu.memory_space<vmem>>, vector<1x8x128xf32>
    %176 = vector.shape_cast %175 : vector<1x8x128xf32> to vector<8x128xf32>
    %177 = vector.shape_cast %173 : vector<8x128xf32> to vector<1x8x128xf32>
    tpu.vector_store %arg10[%174, %c0_56, %c0_57], %177 {strides = array<i32>} : memref<8x8x128xf32, #tpu.memory_space<vmem>>, vector<1x8x128xf32>,
    %c4_i32 = arith.constant 4 : i32
    %178 = arith.index_cast %c4_i32 : i32 to index
    %c0_58 = arith.constant 0 : index
    %c0_59 = arith.constant 0 : index
    %179 = vector.load %arg2[%178, %c0_58, %c0_59] : memref<8x8x32xf32, #tpu.memory_space<vmem>>, vector<1x8x32xf32>
    %180 = vector.shape_cast %179 : vector<1x8x32xf32> to vector<8x32xf32>
    %cst_60 = arith.constant 0.000000e+00 : f32
    %181 = vector.broadcast %cst_60 : f32 to vector<8x32xf32>
    %182 = arith.maximumf %180, %181 : vector<8x32xf32>
    %cst_61 = arith.constant dense<0.000000e+00> : vector<8x96xf32>
    %183 = tpu.matmul %182, %5, %cst_61 {dimension_numbers = #tpu.dot_dimension_numbers<[1], [0], [0], [1], [0, 0, 1, 1], [], []>} : vector<8x32xf32>, vector<32x96xf32>, vector<8x96xf32> -> vector<8x96xf32>
    %184 = arith.addf %183, %3 : vector<8x96xf32>
    %cst_62 = arith.constant dense<0.000000e+00> : vector<8x96xf32>
    %185 = tpu.matmul %171, %6, %cst_62 {dimension_numbers = #tpu.dot_dimension_numbers<[1], [0], [0], [1], [0, 0, 1, 1], [], []>} : vector<8x32xf32>, vector<32x96xf32>, vector<8x96xf32> -> vector<8x96xf32>
    %186 = vector.broadcast %7 : vector<1x96xf32> to vector<8x96xf32>
    %187 = arith.addf %185, %186 : vector<8x96xf32>
    %188 = vector.extract_strided_slice %184 {offsets = [0, 0], sizes = [8, 32], strides = [1, 1]} : vector<8x96xf32> to vector<8x32xf32>
    %189 = vector.extract_strided_slice %187 {offsets = [0, 0], sizes = [8, 32], strides = [1, 1]} : vector<8x96xf32> to vector<8x32xf32>
    %190 = arith.addf %188, %189 : vector<8x32xf32>
    %191 = arith.negf %190 : vector<8x32xf32>
    %192 = math.exp %191 : vector<8x32xf32>
    %cst_63 = arith.constant 1.000000e+00 : f32
    %193 = vector.broadcast %cst_63 : f32 to vector<8x32xf32>
    %194 = arith.addf %193, %192 : vector<8x32xf32>
    %195 = arith.divf %193, %194 : vector<8x32xf32>
    %196 = vector.extract_strided_slice %184 {offsets = [0, 32], sizes = [8, 32], strides = [1, 1]} : vector<8x96xf32> to vector<8x32xf32>
    %197 = vector.extract_strided_slice %187 {offsets = [0, 32], sizes = [8, 32], strides = [1, 1]} : vector<8x96xf32> to vector<8x32xf32>
    %198 = arith.addf %196, %197 : vector<8x32xf32>
    %199 = arith.negf %198 : vector<8x32xf32>
    %200 = math.exp %199 : vector<8x32xf32>
    %cst_64 = arith.constant 1.000000e+00 : f32
    %201 = vector.broadcast %cst_64 : f32 to vector<8x32xf32>
    %202 = arith.addf %201, %200 : vector<8x32xf32>
    %203 = arith.divf %201, %202 : vector<8x32xf32>
    %204 = vector.extract_strided_slice %184 {offsets = [0, 64], sizes = [8, 32], strides = [1, 1]} : vector<8x96xf32> to vector<8x32xf32>
    %205 = vector.extract_strided_slice %187 {offsets = [0, 64], sizes = [8, 32], strides = [1, 1]} : vector<8x96xf32> to vector<8x32xf32>
    %206 = arith.mulf %195, %205 : vector<8x32xf32>
    %207 = arith.addf %204, %206 : vector<8x32xf32>
    %208 = math.tanh %207 : vector<8x32xf32>
    %cst_65 = arith.constant 1.000000e+00 : f32
    %209 = vector.broadcast %cst_65 : f32 to vector<8x32xf32>
    %210 = arith.subf %209, %203 : vector<8x32xf32>
    %211 = arith.mulf %210, %208 : vector<8x32xf32>
    %212 = arith.mulf %203, %171 : vector<8x32xf32>
    %213 = arith.addf %211, %212 : vector<8x32xf32>
    %cst_66 = arith.constant dense<0.000000e+00> : vector<8x128xf32>
    %214 = tpu.matmul %213, %8, %cst_66 {dimension_numbers = #tpu.dot_dimension_numbers<[1], [0], [0], [1], [0, 0, 1, 1], [], []>} : vector<8x32xf32>, vector<32x128xf32>, vector<8x128xf32> -> vector<8x128xf32>
    %215 = arith.addf %214, %4 : vector<8x128xf32>
    %216 = arith.index_cast %c4_i32 : i32 to index
    %c0_67 = arith.constant 0 : index
    %c0_68 = arith.constant 0 : index
    %217 = vector.load %arg10[%216, %c0_67, %c0_68] : memref<8x8x128xf32, #tpu.memory_space<vmem>>, vector<1x8x128xf32>
    %218 = vector.shape_cast %217 : vector<1x8x128xf32> to vector<8x128xf32>
    %219 = vector.shape_cast %215 : vector<8x128xf32> to vector<1x8x128xf32>
    tpu.vector_store %arg10[%216, %c0_67, %c0_68], %219 {strides = array<i32>} : memref<8x8x128xf32, #tpu.memory_space<vmem>>, vector<1x8x128xf32>,
    %c5_i32 = arith.constant 5 : i32
    %220 = arith.index_cast %c5_i32 : i32 to index
    %c0_69 = arith.constant 0 : index
    %c0_70 = arith.constant 0 : index
    %221 = vector.load %arg2[%220, %c0_69, %c0_70] : memref<8x8x32xf32, #tpu.memory_space<vmem>>, vector<1x8x32xf32>
    %222 = vector.shape_cast %221 : vector<1x8x32xf32> to vector<8x32xf32>
    %cst_71 = arith.constant 0.000000e+00 : f32
    %223 = vector.broadcast %cst_71 : f32 to vector<8x32xf32>
    %224 = arith.maximumf %222, %223 : vector<8x32xf32>
    %cst_72 = arith.constant dense<0.000000e+00> : vector<8x96xf32>
    %225 = tpu.matmul %224, %5, %cst_72 {dimension_numbers = #tpu.dot_dimension_numbers<[1], [0], [0], [1], [0, 0, 1, 1], [], []>} : vector<8x32xf32>, vector<32x96xf32>, vector<8x96xf32> -> vector<8x96xf32>
    %226 = arith.addf %225, %3 : vector<8x96xf32>
    %cst_73 = arith.constant dense<0.000000e+00> : vector<8x96xf32>
    %227 = tpu.matmul %213, %6, %cst_73 {dimension_numbers = #tpu.dot_dimension_numbers<[1], [0], [0], [1], [0, 0, 1, 1], [], []>} : vector<8x32xf32>, vector<32x96xf32>, vector<8x96xf32> -> vector<8x96xf32>
    %228 = vector.broadcast %7 : vector<1x96xf32> to vector<8x96xf32>
    %229 = arith.addf %227, %228 : vector<8x96xf32>
    %230 = vector.extract_strided_slice %226 {offsets = [0, 0], sizes = [8, 32], strides = [1, 1]} : vector<8x96xf32> to vector<8x32xf32>
    %231 = vector.extract_strided_slice %229 {offsets = [0, 0], sizes = [8, 32], strides = [1, 1]} : vector<8x96xf32> to vector<8x32xf32>
    %232 = arith.addf %230, %231 : vector<8x32xf32>
    %233 = arith.negf %232 : vector<8x32xf32>
    %234 = math.exp %233 : vector<8x32xf32>
    %cst_74 = arith.constant 1.000000e+00 : f32
    %235 = vector.broadcast %cst_74 : f32 to vector<8x32xf32>
    %236 = arith.addf %235, %234 : vector<8x32xf32>
    %237 = arith.divf %235, %236 : vector<8x32xf32>
    %238 = vector.extract_strided_slice %226 {offsets = [0, 32], sizes = [8, 32], strides = [1, 1]} : vector<8x96xf32> to vector<8x32xf32>
    %239 = vector.extract_strided_slice %229 {offsets = [0, 32], sizes = [8, 32], strides = [1, 1]} : vector<8x96xf32> to vector<8x32xf32>
    %240 = arith.addf %238, %239 : vector<8x32xf32>
    %241 = arith.negf %240 : vector<8x32xf32>
    %242 = math.exp %241 : vector<8x32xf32>
    %cst_75 = arith.constant 1.000000e+00 : f32
    %243 = vector.broadcast %cst_75 : f32 to vector<8x32xf32>
    %244 = arith.addf %243, %242 : vector<8x32xf32>
    %245 = arith.divf %243, %244 : vector<8x32xf32>
    %246 = vector.extract_strided_slice %226 {offsets = [0, 64], sizes = [8, 32], strides = [1, 1]} : vector<8x96xf32> to vector<8x32xf32>
    %247 = vector.extract_strided_slice %229 {offsets = [0, 64], sizes = [8, 32], strides = [1, 1]} : vector<8x96xf32> to vector<8x32xf32>
    %248 = arith.mulf %237, %247 : vector<8x32xf32>
    %249 = arith.addf %246, %248 : vector<8x32xf32>
    %250 = math.tanh %249 : vector<8x32xf32>
    %cst_76 = arith.constant 1.000000e+00 : f32
    %251 = vector.broadcast %cst_76 : f32 to vector<8x32xf32>
    %252 = arith.subf %251, %245 : vector<8x32xf32>
    %253 = arith.mulf %252, %250 : vector<8x32xf32>
    %254 = arith.mulf %245, %213 : vector<8x32xf32>
    %255 = arith.addf %253, %254 : vector<8x32xf32>
    %cst_77 = arith.constant dense<0.000000e+00> : vector<8x128xf32>
    %256 = tpu.matmul %255, %8, %cst_77 {dimension_numbers = #tpu.dot_dimension_numbers<[1], [0], [0], [1], [0, 0, 1, 1], [], []>} : vector<8x32xf32>, vector<32x128xf32>, vector<8x128xf32> -> vector<8x128xf32>
    %257 = arith.addf %256, %4 : vector<8x128xf32>
    %258 = arith.index_cast %c5_i32 : i32 to index
    %c0_78 = arith.constant 0 : index
    %c0_79 = arith.constant 0 : index
    %259 = vector.load %arg10[%258, %c0_78, %c0_79] : memref<8x8x128xf32, #tpu.memory_space<vmem>>, vector<1x8x128xf32>
    %260 = vector.shape_cast %259 : vector<1x8x128xf32> to vector<8x128xf32>
    %261 = vector.shape_cast %257 : vector<8x128xf32> to vector<1x8x128xf32>
    tpu.vector_store %arg10[%258, %c0_78, %c0_79], %261 {strides = array<i32>} : memref<8x8x128xf32, #tpu.memory_space<vmem>>, vector<1x8x128xf32>,
    %c6_i32 = arith.constant 6 : i32
    %262 = arith.index_cast %c6_i32 : i32 to index
    %c0_80 = arith.constant 0 : index
    %c0_81 = arith.constant 0 : index
    %263 = vector.load %arg2[%262, %c0_80, %c0_81] : memref<8x8x32xf32, #tpu.memory_space<vmem>>, vector<1x8x32xf32>
    %264 = vector.shape_cast %263 : vector<1x8x32xf32> to vector<8x32xf32>
    %cst_82 = arith.constant 0.000000e+00 : f32
    %265 = vector.broadcast %cst_82 : f32 to vector<8x32xf32>
    %266 = arith.maximumf %264, %265 : vector<8x32xf32>
    %cst_83 = arith.constant dense<0.000000e+00> : vector<8x96xf32>
    %267 = tpu.matmul %266, %5, %cst_83 {dimension_numbers = #tpu.dot_dimension_numbers<[1], [0], [0], [1], [0, 0, 1, 1], [], []>} : vector<8x32xf32>, vector<32x96xf32>, vector<8x96xf32> -> vector<8x96xf32>
    %268 = arith.addf %267, %3 : vector<8x96xf32>
    %cst_84 = arith.constant dense<0.000000e+00> : vector<8x96xf32>
    %269 = tpu.matmul %255, %6, %cst_84 {dimension_numbers = #tpu.dot_dimension_numbers<[1], [0], [0], [1], [0, 0, 1, 1], [], []>} : vector<8x32xf32>, vector<32x96xf32>, vector<8x96xf32> -> vector<8x96xf32>
    %270 = vector.broadcast %7 : vector<1x96xf32> to vector<8x96xf32>
    %271 = arith.addf %269, %270 : vector<8x96xf32>
    %272 = vector.extract_strided_slice %268 {offsets = [0, 0], sizes = [8, 32], strides = [1, 1]} : vector<8x96xf32> to vector<8x32xf32>
    %273 = vector.extract_strided_slice %271 {offsets = [0, 0], sizes = [8, 32], strides = [1, 1]} : vector<8x96xf32> to vector<8x32xf32>
    %274 = arith.addf %272, %273 : vector<8x32xf32>
    %275 = arith.negf %274 : vector<8x32xf32>
    %276 = math.exp %275 : vector<8x32xf32>
    %cst_85 = arith.constant 1.000000e+00 : f32
    %277 = vector.broadcast %cst_85 : f32 to vector<8x32xf32>
    %278 = arith.addf %277, %276 : vector<8x32xf32>
    %279 = arith.divf %277, %278 : vector<8x32xf32>
    %280 = vector.extract_strided_slice %268 {offsets = [0, 32], sizes = [8, 32], strides = [1, 1]} : vector<8x96xf32> to vector<8x32xf32>
    %281 = vector.extract_strided_slice %271 {offsets = [0, 32], sizes = [8, 32], strides = [1, 1]} : vector<8x96xf32> to vector<8x32xf32>
    %282 = arith.addf %280, %281 : vector<8x32xf32>
    %283 = arith.negf %282 : vector<8x32xf32>
    %284 = math.exp %283 : vector<8x32xf32>
    %cst_86 = arith.constant 1.000000e+00 : f32
    %285 = vector.broadcast %cst_86 : f32 to vector<8x32xf32>
    %286 = arith.addf %285, %284 : vector<8x32xf32>
    %287 = arith.divf %285, %286 : vector<8x32xf32>
    %288 = vector.extract_strided_slice %268 {offsets = [0, 64], sizes = [8, 32], strides = [1, 1]} : vector<8x96xf32> to vector<8x32xf32>
    %289 = vector.extract_strided_slice %271 {offsets = [0, 64], sizes = [8, 32], strides = [1, 1]} : vector<8x96xf32> to vector<8x32xf32>
    %290 = arith.mulf %279, %289 : vector<8x32xf32>
    %291 = arith.addf %288, %290 : vector<8x32xf32>
    %292 = math.tanh %291 : vector<8x32xf32>
    %cst_87 = arith.constant 1.000000e+00 : f32
    %293 = vector.broadcast %cst_87 : f32 to vector<8x32xf32>
    %294 = arith.subf %293, %287 : vector<8x32xf32>
    %295 = arith.mulf %294, %292 : vector<8x32xf32>
    %296 = arith.mulf %287, %255 : vector<8x32xf32>
    %297 = arith.addf %295, %296 : vector<8x32xf32>
    %cst_88 = arith.constant dense<0.000000e+00> : vector<8x128xf32>
    %298 = tpu.matmul %297, %8, %cst_88 {dimension_numbers = #tpu.dot_dimension_numbers<[1], [0], [0], [1], [0, 0, 1, 1], [], []>} : vector<8x32xf32>, vector<32x128xf32>, vector<8x128xf32> -> vector<8x128xf32>
    %299 = arith.addf %298, %4 : vector<8x128xf32>
    %300 = arith.index_cast %c6_i32 : i32 to index
    %c0_89 = arith.constant 0 : index
    %c0_90 = arith.constant 0 : index
    %301 = vector.load %arg10[%300, %c0_89, %c0_90] : memref<8x8x128xf32, #tpu.memory_space<vmem>>, vector<1x8x128xf32>
    %302 = vector.shape_cast %301 : vector<1x8x128xf32> to vector<8x128xf32>
    %303 = vector.shape_cast %299 : vector<8x128xf32> to vector<1x8x128xf32>
    tpu.vector_store %arg10[%300, %c0_89, %c0_90], %303 {strides = array<i32>} : memref<8x8x128xf32, #tpu.memory_space<vmem>>, vector<1x8x128xf32>,
    %c7_i32 = arith.constant 7 : i32
    %304 = arith.index_cast %c7_i32 : i32 to index
    %c0_91 = arith.constant 0 : index
    %c0_92 = arith.constant 0 : index
    %305 = vector.load %arg2[%304, %c0_91, %c0_92] : memref<8x8x32xf32, #tpu.memory_space<vmem>>, vector<1x8x32xf32>
    %306 = vector.shape_cast %305 : vector<1x8x32xf32> to vector<8x32xf32>
    %cst_93 = arith.constant 0.000000e+00 : f32
    %307 = vector.broadcast %cst_93 : f32 to vector<8x32xf32>
    %308 = arith.maximumf %306, %307 : vector<8x32xf32>
    %cst_94 = arith.constant dense<0.000000e+00> : vector<8x96xf32>
    %309 = tpu.matmul %308, %5, %cst_94 {dimension_numbers = #tpu.dot_dimension_numbers<[1], [0], [0], [1], [0, 0, 1, 1], [], []>} : vector<8x32xf32>, vector<32x96xf32>, vector<8x96xf32> -> vector<8x96xf32>
    %310 = arith.addf %309, %3 : vector<8x96xf32>
    %cst_95 = arith.constant dense<0.000000e+00> : vector<8x96xf32>
    %311 = tpu.matmul %297, %6, %cst_95 {dimension_numbers = #tpu.dot_dimension_numbers<[1], [0], [0], [1], [0, 0, 1, 1], [], []>} : vector<8x32xf32>, vector<32x96xf32>, vector<8x96xf32> -> vector<8x96xf32>
    %312 = vector.broadcast %7 : vector<1x96xf32> to vector<8x96xf32>
    %313 = arith.addf %311, %312 : vector<8x96xf32>
    %314 = vector.extract_strided_slice %310 {offsets = [0, 0], sizes = [8, 32], strides = [1, 1]} : vector<8x96xf32> to vector<8x32xf32>
    %315 = vector.extract_strided_slice %313 {offsets = [0, 0], sizes = [8, 32], strides = [1, 1]} : vector<8x96xf32> to vector<8x32xf32>
    %316 = arith.addf %314, %315 : vector<8x32xf32>
    %317 = arith.negf %316 : vector<8x32xf32>
    %318 = math.exp %317 : vector<8x32xf32>
    %cst_96 = arith.constant 1.000000e+00 : f32
    %319 = vector.broadcast %cst_96 : f32 to vector<8x32xf32>
    %320 = arith.addf %319, %318 : vector<8x32xf32>
    %321 = arith.divf %319, %320 : vector<8x32xf32>
    %322 = vector.extract_strided_slice %310 {offsets = [0, 32], sizes = [8, 32], strides = [1, 1]} : vector<8x96xf32> to vector<8x32xf32>
    %323 = vector.extract_strided_slice %313 {offsets = [0, 32], sizes = [8, 32], strides = [1, 1]} : vector<8x96xf32> to vector<8x32xf32>
    %324 = arith.addf %322, %323 : vector<8x32xf32>
    %325 = arith.negf %324 : vector<8x32xf32>
    %326 = math.exp %325 : vector<8x32xf32>
    %cst_97 = arith.constant 1.000000e+00 : f32
    %327 = vector.broadcast %cst_97 : f32 to vector<8x32xf32>
    %328 = arith.addf %327, %326 : vector<8x32xf32>
    %329 = arith.divf %327, %328 : vector<8x32xf32>
    %330 = vector.extract_strided_slice %310 {offsets = [0, 64], sizes = [8, 32], strides = [1, 1]} : vector<8x96xf32> to vector<8x32xf32>
    %331 = vector.extract_strided_slice %313 {offsets = [0, 64], sizes = [8, 32], strides = [1, 1]} : vector<8x96xf32> to vector<8x32xf32>
    %332 = arith.mulf %321, %331 : vector<8x32xf32>
    %333 = arith.addf %330, %332 : vector<8x32xf32>
    %334 = math.tanh %333 : vector<8x32xf32>
    %cst_98 = arith.constant 1.000000e+00 : f32
    %335 = vector.broadcast %cst_98 : f32 to vector<8x32xf32>
    %336 = arith.subf %335, %329 : vector<8x32xf32>
    %337 = arith.mulf %336, %334 : vector<8x32xf32>
    %338 = arith.mulf %329, %297 : vector<8x32xf32>
    %339 = arith.addf %337, %338 : vector<8x32xf32>
    %cst_99 = arith.constant dense<0.000000e+00> : vector<8x128xf32>
    %340 = tpu.matmul %339, %8, %cst_99 {dimension_numbers = #tpu.dot_dimension_numbers<[1], [0], [0], [1], [0, 0, 1, 1], [], []>} : vector<8x32xf32>, vector<32x128xf32>, vector<8x128xf32> -> vector<8x128xf32>
    %341 = arith.addf %340, %4 : vector<8x128xf32>
    %342 = arith.index_cast %c7_i32 : i32 to index
    %c0_100 = arith.constant 0 : index
    %c0_101 = arith.constant 0 : index
    %343 = vector.load %arg10[%342, %c0_100, %c0_101] : memref<8x8x128xf32, #tpu.memory_space<vmem>>, vector<1x8x128xf32>
    %344 = vector.shape_cast %343 : vector<1x8x128xf32> to vector<8x128xf32>
    %345 = vector.shape_cast %341 : vector<8x128xf32> to vector<1x8x128xf32>
    tpu.vector_store %arg10[%342, %c0_100, %c0_101], %345 {strides = array<i32>} : memref<8x8x128xf32, #tpu.memory_space<vmem>>, vector<1x8x128xf32>,
    %c8_i32 = arith.constant 8 : i32
    %c0_102 = arith.constant 0 : index
    %c0_103 = arith.constant 0 : index
    %346 = vector.load %arg11[%c0_102, %c0_103] : memref<8x32xf32, #tpu.memory_space<vmem>>, vector<8x32xf32>
    tpu.vector_store %arg11[%c0_102, %c0_103], %339 {strides = array<i32>} : memref<8x32xf32, #tpu.memory_space<vmem>>, vector<8x32xf32>,
    return
  }
  func.func @transform_0(%arg0: i32, %arg1: i32) -> (i32, i32, i32) {
    %c0_i32 = arith.constant 0 : i32
    %c0_i32_0 = arith.constant 0 : i32
    return %arg1, %arg0, %c0_i32 : i32, i32, i32
  }
  func.func @transform_1(%arg0: i32, %arg1: i32) -> (i32, i32) {
    %c0_i32 = arith.constant 0 : i32
    %c0_i32_0 = arith.constant 0 : i32
    return %arg0, %c0_i32 : i32, i32
  }
  func.func @transform_2(%arg0: i32, %arg1: i32) -> (i32, i32) {
    %c0_i32 = arith.constant 0 : i32
    %c0_i32_0 = arith.constant 0 : i32
    return %arg0, %c0_i32 : i32, i32
  }
  func.func @transform_3(%arg0: i32, %arg1: i32) -> (i32, i32) {
    %c0_i32 = arith.constant 0 : i32
    %c0_i32_0 = arith.constant 0 : i32
    return %arg0, %c0_i32 : i32, i32
  }
  func.func @transform_4(%arg0: i32, %arg1: i32) -> (i32, i32) {
    %c0_i32 = arith.constant 0 : i32
    %c0_i32_0 = arith.constant 0 : i32
    %c0_i32_1 = arith.constant 0 : i32
    return %c0_i32, %c0_i32_0 : i32, i32
  }
  func.func @transform_5(%arg0: i32, %arg1: i32) -> (i32, i32) {
    %c0_i32 = arith.constant 0 : i32
    %c0_i32_0 = arith.constant 0 : i32
    %c0_i32_1 = arith.constant 0 : i32
    return %c0_i32, %c0_i32_0 : i32, i32
  }
  func.func @transform_6(%arg0: i32, %arg1: i32) -> (i32, i32) {
    %c0_i32 = arith.constant 0 : i32
    %c0_i32_0 = arith.constant 0 : i32
    %c0_i32_1 = arith.constant 0 : i32
    return %c0_i32, %c0_i32_0 : i32, i32
  }
  func.func @transform_7(%arg0: i32, %arg1: i32) -> (i32, i32) {
    %c0_i32 = arith.constant 0 : i32
    %c0_i32_0 = arith.constant 0 : i32
    %c0_i32_1 = arith.constant 0 : i32
    return %c0_i32, %c0_i32_0 : i32, i32
  }
  func.func @transform_8(%arg0: i32, %arg1: i32) -> (i32, i32, i32) {
    %c0_i32 = arith.constant 0 : i32
    %c0_i32_0 = arith.constant 0 : i32
    return %arg1, %arg0, %c0_i32 : i32, i32, i32
  }
}

</mosaic_0001>

<bundles_post_ra>
// kernel: tpu_custom_call.1
= control target key start
LH: loop header
LB: loop body
LE: loop exit
PB: predicated region body
PF: predicated region fallthrough
CT: control target
= control target key end

     0   :  { %s4337_s0 = inlined_call_operand.hbm [shape: f32[24,8,32], index: 0, kind: input, shape index: {}]   ;;  %s4338_s1 = inlined_call_operand.hbm [shape: f32[8,96], index: 1, kind: input, shape index: {}]   ;;  %s4339_s2 = inlined_call_operand.hbm [shape: f32[8,32], index: 2, kind: input, shape index: {}]   ;;  %s4340_s3 = inlined_call_operand.vmem [shape: f32[8,128], index: 3, kind: input, shape index: {}]   ;;  %s4341_s4 = inlined_call_operand.hbm [shape: f32[32,96], index: 4, kind: input, shape index: {}]   ;;  %s4342_s5 = inlined_call_operand.hbm [shape: f32[32,96], index: 5, kind: input, shape index: {}]   ;;  %s4343_s6 = inlined_call_operand.vmem [shape: f32[1,96], index: 6, kind: input, shape index: {}]   ;;  %s4344_s7 = inlined_call_operand.hbm [shape: f32[32,128], index: 7, kind: input, shape index: {}]   ;;  %s4345_s8 = inlined_call_operand.hbm [shape: f32[24,8,128], index: 8, kind: output, shape index: {}]  }
   0x1   :  { %4355 = sst [smem:[#allocation20_spill]] %s4338_s1 }
   0x2   :  { %4356 = sst [smem:[#allocation21_spill]] %s4339_s2 }
   0x3   :  { %4357 = sst [smem:[#allocation22_spill]] %s4341_s4 }
   0x4   :  { %4358 = sst [smem:[#allocation23_spill]] %s4342_s5 }
   0x5   :  { %13 = vsyncpa [#allocation4], 0 }
   0x6   :  { %15 = vsyncpa [#allocation4 + $0x1], 0 }
   0x7   :  { %16 = vsyncpa [#allocation7], 0 }
   0x8   :  { %17 = vsyncpa [#allocation10], 0 }
   0x9   :  { %18 = vsyncpa [#allocation13], 0 }
   0xa   :  { %19 = vsyncpa [#allocation5], 0 }
   0xb   :  { %21 = vsyncpa [#allocation5 + $0x1], 0  ;;  %s3741_s27 = smov 0   ;;  %s3743_s28 = smov 0  }
   0xc   :  { %s3745_s29 = smov 0   ;;  %s3747_s30 = smov 0  }
   0xd   :  { %s3749_s9 = smov 0   ;;  %s3751_s10 = smov 0  }
   0xe LB: > { %s4349_s11 = sadd.s32 4294967295, %s3677_s10   ;;  %p2640_p0 = scmp.ge.s32.totalorder %s3677_s10, 1  ;;  %s3677_s10 = sphi %s3751_s10, %s27_s10   ;;  %s3673_s9 = sphi %s3749_s9, %s4384_s9   ;;  %s3669_s30 = sphi %s3747_s30, %s4383_s30   ;;  %s3665_s29 = sphi %s3745_s29, %s4382_s29   ;;  %s3661_s28 = sphi %s3743_s28, %s4381_s28   ;;  %s3657_s27 = sphi %s3741_s27, %s4380_s27  }
   0xf   : > { %p3775_p1 = scmp.eq.s32.totalorder %s4349_s11, 0  ;;  %p262_p2 = scmp.lt.s32.totalorder %s3677_s10, 4 }
  0x10   : > { %s3679_s14 = smov [#allocation6]   ;;  %s3680_s16 = smov [#allocation9]  }
  0x11   : > { %s4359_s12 = scalar_select %p3775_p1, 1, 0 }
  0x12   : > { %p3780_p3 = pnand %p2640_p0, %p262_p2  ;;  %s277_s15 = sshll.u32 %s3679_s14, 4  ;;  %s278_s15 = int_to_ptr.vmem [resolvable:$true] %s277_s15 }
  0x13   : > { %s307_s17 = sshll.u32 %s3680_s16, 4  ;;  %s3681_s19 = smov [#allocation8]   ;;  %s3792_s17 = int_to_ptr.vmem [resolvable:$true] %s307_s17 }
  0x14   : > { %s4360_s13 = scalar_select %p3780_p3, 1, 0 }
  0x15   : > { %p3266_p4 = pneg %p3780_p3  ;;  %s3794_s20 = sshll.u32 %s3681_s19, 4  ;;  %s291_s20 = int_to_ptr.vmem [resolvable:$true] %s3794_s20 }
  0x16   : > { %s4362_s1 = sld [smem:[#allocation20_spill]] }
  0x17   : > { %p3788_p5 = pnand %p3266_p4, %p3775_p1 }
  0x19   : > { %p3804_p7 = pneg %p3788_p5 }
  0x1c   : > { %s3413_s23 = scalar_lea.hbm %s4362_s1, 128 }
  0x1d   : > { %p3414_p6 = scmp.ne.s32.totalorder %s4362_s1, %s3413_s23  ;;  %p3420_p10 = scmp.lt.u32.totalorder %s3413_s23, %s4362_s1 }
  0x1f   : > { %p3416_p8 = pnand %p3804_p7, %p3414_p6 }
  0x21   : > { %p3417_p9 = pneg %p3416_p8 }
  0x23   : > { %p3422_p11 = pnand %p3420_p10, %p3417_p9 }
  0x25   : > { %3425 = shalt.err (!%p3422_p11)
}
  0x26   : > { %s3426_s19 = scalar_lea.vmem %s278_s15, 128  ;;  %p3434_p2 = scmp.lt.s32.totalorder %s278_s15, %s278_s15 }
  0x27   : > { %p3427_p12 = scmp.ne.s32.totalorder %s278_s15, %s3426_s19  ;;  %p3435_p4 = scmp.lt.s32.totalorder %s3426_s19, %s3426_s19 }
  0x29   : > { %p3429_p13 = pnand %p3427_p12, %p3804_p7  ;;  %p3436_p3 = por %p3435_p4, %p3434_p2 }
  0x2b   : > { %p3430_p0 = pneg %p3429_p13 }
  0x2d   : > { %p3437_p1 = pnand %p3436_p3, %p3430_p0 }
  0x2f   : > { %3440 = shalt.err (!%p3437_p1)
}
  0x30   : > { %3269 = dma.hbm_to_vmem [thread:$0]  (!%p3788_p5), %s4362_s1, 128, %s278_s15, [#allocation7]  }
  0x31   : > { %s4364_s4 = sld [smem:[#allocation22_spill]] }
  0x37   : > { %s3441_s25 = scalar_lea.hbm %s4364_s4, 512 }
  0x38   : > { %p3442_p6 = scmp.ne.s32.totalorder %s4364_s4, %s3441_s25  ;;  %p3448_p1 = scmp.lt.u32.totalorder %s3441_s25, %s4364_s4 }
  0x3a   : > { %p3444_p8 = pnand %p3442_p6, %p3804_p7 }
  0x3c   : > { %p3445_p9 = pneg %p3444_p8 }
  0x3e   : > { %p3450_p3 = pnand %p3448_p1, %p3445_p9 }
  0x40   : > { %3453 = shalt.err (!%p3450_p3)
}
  0x41   : > { %s3454_s15 = scalar_lea.vmem %s3792_s17, 512  ;;  %p3462_p13 = scmp.lt.s32.totalorder %s3792_s17, %s3792_s17 }
  0x42   : > { %p3455_p10 = scmp.ne.s32.totalorder %s3792_s17, %s3454_s15  ;;  %p3463_p0 = scmp.lt.s32.totalorder %s3454_s15, %s3454_s15 }
  0x44   : > { %p3457_p11 = pnand %p3455_p10, %p3804_p7  ;;  %p3464_p2 = por %p3463_p0, %p3462_p13 }
  0x46   : > { %p3458_p12 = pneg %p3457_p11 }
  0x48   : > { %p3465_p4 = pnand %p3464_p2, %p3458_p12 }
  0x4a   : > { %3468 = shalt.err (!%p3465_p4)
}
  0x4b   : > { %s4350_s21 = smov 128   ;;  %s4352_s11 = smov 8  }
  0x4c   : > { %3275 = dma.hbm_to_vmem [thread:$0]  (!%p3788_p5), %s4364_s4, 512, %s3792_s17, [#allocation10], %s4350_s21, %s4350_s21, %s4352_s11  }
  0x4d   : > { %s4365_s2 = sld [smem:[#allocation21_spill]] }
  0x53   : > { %s3469_s14 = scalar_lea.hbm %s4365_s2, 128 }
  0x54   : > { %p3470_p6 = scmp.ne.s32.totalorder %s4365_s2, %s3469_s14  ;;  %p3476_p1 = scmp.lt.u32.totalorder %s3469_s14, %s4365_s2 }
  0x56   : > { %p3472_p8 = pnand %p3470_p6, %p3804_p7 }
  0x58   : > { %p3473_p9 = pneg %p3472_p8 }
  0x5a   : > { %p3478_p3 = pnand %p3476_p1, %p3473_p9 }
  0x5c   : > { %3481 = shalt.err (!%p3478_p3)
}
  0x5d   : > { %s3482_s22 = scalar_lea.vmem %s291_s20, 128  ;;  %p3490_p13 = scmp.lt.s32.totalorder %s291_s20, %s291_s20 }
  0x5e   : > { %p3483_p10 = scmp.ne.s32.totalorder %s291_s20, %s3482_s22  ;;  %p3491_p0 = scmp.lt.s32.totalorder %s3482_s22, %s3482_s22 }
  0x60   : > { %p3485_p11 = pnand %p3483_p10, %p3804_p7  ;;  %p3492_p2 = por %p3491_p0, %p3490_p13 }
  0x62   : > { %p3486_p12 = pneg %p3485_p11 }
  0x64   : > { %p3493_p4 = pnand %p3492_p2, %p3486_p12 }
  0x66   : > { %3496 = shalt.err (!%p3493_p4)
}
  0x67   : > { %3272 = dma.hbm_to_vmem [thread:$0]  (!%p3788_p5), %s4365_s2, 128, %s291_s20, [#allocation7]  }
  0x68   : > { %s3684_s1 = smov [#allocation11]   ;;  %s3685_s25 = smov [#allocation12]  }
  0x69   : > { %s320_s24 = sshll.u32 %s3684_s1, 4  ;;  %s336_s14 = sshll.u32 %s3685_s25, 4  ;;  %s321_s24 = int_to_ptr.vmem [resolvable:$true] %s320_s24  ;;  %s337_s14 = int_to_ptr.vmem [resolvable:$true] %s336_s14 }
  0x6a   : > { %s4366_s5 = sld [smem:[#allocation23_spill]] }
  0x70   : > { %s3497_s15 = scalar_lea.hbm %s4366_s5, 512 }
  0x71   : > { %p3498_p6 = scmp.ne.s32.totalorder %s4366_s5, %s3497_s15  ;;  %p3504_p1 = scmp.lt.u32.totalorder %s3497_s15, %s4366_s5 }
  0x73   : > { %p3500_p8 = pnand %p3498_p6, %p3804_p7 }
  0x75   : > { %p3501_p9 = pneg %p3500_p8 }
  0x77   : > { %p3506_p3 = pnand %p3504_p1, %p3501_p9 }
  0x79   : > { %3509 = shalt.err (!%p3506_p3)
}
  0x7a   : > { %s3510_s20 = scalar_lea.vmem %s321_s24, 512  ;;  %p3518_p13 = scmp.lt.s32.totalorder %s321_s24, %s321_s24 }
  0x7b   : > { %p3511_p10 = scmp.ne.s32.totalorder %s321_s24, %s3510_s20  ;;  %p3519_p0 = scmp.lt.s32.totalorder %s3510_s20, %s3510_s20 }
  0x7d   : > { %p3513_p11 = pnand %p3511_p10, %p3804_p7  ;;  %p3520_p2 = por %p3519_p0, %p3518_p13 }
  0x7f   : > { %p3514_p12 = pneg %p3513_p11 }
  0x81   : > { %p3521_p4 = pnand %p3520_p2, %p3514_p12 }
  0x83   : > { %3524 = shalt.err (!%p3521_p4)
}
  0x84   : > { %s4367_s21 = smov 8   ;;  %s4368_s23 = smov 128  }
  0x85   : > { %3278 = dma.hbm_to_vmem [thread:$0]  (!%p3788_p5), %s4366_s5, 512, %s321_s24, [#allocation10], %s4368_s23, %s4368_s23, %s4367_s21  }
  0x86   : > { %s3525_s19 = scalar_lea.hbm %s4344_s7, 512 }
  0x87   : > { %p3526_p6 = scmp.ne.s32.totalorder %s4344_s7, %s3525_s19  ;;  %p3532_p1 = scmp.lt.u32.totalorder %s3525_s19, %s4344_s7 }
  0x89   : > { %p3528_p8 = pnand %p3526_p6, %p3804_p7 }
  0x8b   : > { %p3529_p9 = pneg %p3528_p8 }
  0x8d   : > { %p3534_p3 = pnand %p3532_p1, %p3529_p9 }
  0x8f   : > { %3537 = shalt.err (!%p3534_p3)
}
  0x90   : > { %s3538_s11 = scalar_lea.vmem %s337_s14, 512  ;;  %p3546_p13 = scmp.lt.s32.totalorder %s337_s14, %s337_s14 }
  0x91   : > { %p3539_p10 = scmp.ne.s32.totalorder %s337_s14, %s3538_s11  ;;  %p3547_p0 = scmp.lt.s32.totalorder %s3538_s11, %s3538_s11 }
  0x93   : > { %p3541_p11 = pnand %p3539_p10, %p3804_p7  ;;  %p3548_p2 = por %p3547_p0, %p3546_p13 }
  0x95   : > { %p3542_p12 = pneg %p3541_p11 }
  0x97   : > { %p3549_p4 = pnand %p3548_p2, %p3542_p12 }
  0x99   : > { %3552 = shalt.err (!%p3549_p4)
}
  0x9a   : > { %3281 = dma.hbm_to_vmem [thread:$0]  (!%p3788_p5), %s4344_s7, 512, %s337_s14, [#allocation13], %s4368_s23, %s4368_s23, %s4367_s21  }
  0x9b   : > { %s2639_s18 = sadd.s32 4294967294, %s3677_s10   ;;  %s36_s26 = sadd.s32 1, %s3673_s9 }
  0x9c   : > { %s48_s25 = sadd.s32 1, %s3665_s29  ;;  %p37_p7 = scmp.ge.s32.totalorder %s36_s26, 3 }
  0x9d   : > { %p55_p6 = scmp.ne.s32.totalorder %s3665_s29, %s3661_s28  ;;  %p56_p8 = scmp.eq.s32.totalorder %s3677_s10, 0 }
  0x9e   : > { %p61_p9 = scmp.ne.s32.totalorder %s3661_s28, %s3657_s27  ;;  %s4386_s26 = smov (%p37_p7, %s36_s26), 0 }
  0x9f   : > { %p3917_p1 = por %p56_p8, %p55_p6  ;;  %p4370_p3 = scmp.ne.s32.totalorder %s4359_s12, 0 }
  0xa0   : > { %s43_s19 = ssub.s32 %s3673_s9, %s4386_s26  ;;  %s4372_s15 = sadd.s32 4294967295, %s3677_s10  }
  0xa1   : > { %p3923_p5 = por %p4370_p3, %p61_p9  ;;  %p249_p10 = scmp.eq.s32.totalorder %s4372_s15, 2 }
  0xa2   : > { %p46_p11 = scmp.eq.s32.totalorder %s43_s19, 0  ;;  %p255_p12 = scmp.eq.s32.totalorder %s2639_s18, 2 }
  0xa3   : > { %p3931_p13 = por %p249_p10, %p55_p6  ;;  %p3295_p0 = scmp.lt.s32.totalorder %s3677_s10, 3 }
  0xa4   : > { %s3937_s17 = scalar_select %p46_p11, %s3665_s29, %s48_s25  }
  0xa5   : > { %s4373_s22 = scalar_select %p3931_p13, 1, 0 }
  0xa6   : > { %p3939_p2 = por %p255_p12, %p61_p9  ;;  %s350_s11 = sand.u32 1, %s3665_s29  }
  0xa7   : > { %s2648_s24 = sshll.u32 %s350_s11, 6  ;;  %s2712_s1 = sshll.u32 %s3673_s9, 10 }
  0xa8   : > { %s4374_s20 = scalar_select %p3939_p2, 1, 0 }
  0xa9   : > { %s3948_s15 = scalar_lea.hbm %s4337_s0, %s2712_s1  ;;  %s354_s18 = scalar_lea.vmem [#allocation3], %s2648_s24 }
  0xaa   : > { %s362_s19 = sshll.u32 %s354_s18, 4  ;;  %p3954_p4 = pnand %p3295_p0, %p3917_p1  ;;  %s3950_s19 = int_to_ptr.vmem [resolvable:$true] %s362_s19 }
  0xab   : > { %s3958_s5 = scalar_lea.sflag [#allocation4], %s350_s11  ;;  %s3553_s2 = scalar_lea.hbm %s3948_s15, 1024 }
  0xac   : > { %p3554_p7 = scmp.ne.s32.totalorder %s3948_s15, %s3553_s2  ;;  %p3555_p6 = pneg %p3954_p4 }
  0xad   : > { %s3558_s16 = scalar_lea.hbm %s4337_s0, 3072  ;;  %p3559_p1 = scmp.lt.u32.totalorder %s3948_s15, %s4337_s0 }
  0xae   : > { %p3556_p8 = pnand %p3555_p6, %p3554_p7  ;;  %p3560_p3 = scmp.lt.u32.totalorder %s3558_s16, %s3553_s2 }
  0xaf   : > { %p3562_p11 = scmp.lt.u32.totalorder %s3553_s2, %s3948_s15 }
  0xb0   : > { %p3557_p9 = pneg %p3556_p8  ;;  %p3561_p10 = por %p3560_p3, %p3559_p1 }
  0xb2   : > { %p3563_p12 = por %p3562_p11, %p3561_p10 }
  0xb4   : > { %p3564_p0 = pnand %p3563_p12, %p3557_p9 }
  0xb6   : > { %3567 = shalt.err (!%p3564_p0)
}
  0xb7   : > { %s3568_s11 = scalar_lea.vmem %s3950_s19, 1024  ;;  %s3686_s4 = smov [#allocation3]  }
  0xb8   : > { %p3569_p7 = scmp.ne.s32.totalorder %s3950_s19, %s3568_s11  ;;  %s3573_s24 = sshll.u32 %s3686_s4, 4  ;;  %s3574_s24 = int_to_ptr.vmem [resolvable:$false] %s3573_s24 }
  0xb9   : > { %s3575_s1 = scalar_lea.vmem %s3574_s24, 2048  ;;  %p3576_p13 = scmp.lt.s32.totalorder %s3950_s19, %s3574_s24 }
  0xba   : > { %p3571_p8 = pnand %p3569_p7, %p3555_p6  ;;  %p3577_p1 = scmp.lt.s32.totalorder %s3575_s1, %s3568_s11 }
  0xbc   : > { %p3572_p2 = pneg %p3571_p8  ;;  %p3578_p3 = por %p3577_p1, %p3576_p13 }
  0xbe   : > { %p3579_p10 = pnand %p3578_p3, %p3572_p2 }
  0xc0   : > { %3582 = shalt.err (!%p3579_p10)
}
  0xc1   : > { %3285 = dma.hbm_to_vmem [thread:$0]  (!%p3954_p4), %s3948_s15, 1024, %s3950_s19, %s3958_s5, %s4368_s23, %s4368_s23, %s4367_s21  }
  0xc2   : > { %p4376_p6 = scmp.ne.s32.totalorder %s4360_s13, 0 }
  0xc3   : > { %s3992_s2 = sand.u32 (!%p4376_p6), 1, %s3661_s28  }
  0xc4   : > { %374 = sbr.rel (%p4376_p6) target bundleno = 6064 (0x17b0), region = 52  ;;  %s2652_s16 = sshll.u32 (!%p4376_p6), %s3992_s2, 6 }
  0xc5   : > { %s377_s18 = scalar_lea.sflag (!%p4376_p6), [#allocation4], %s3992_s2  ;;  %s3996_s11 = scalar_lea.vmem (!%p4376_p6), [#allocation3], %s2652_s16 }
  0xcb   : > { %3636 = dma.done.wait (%p3923_p5), %s377_s18, 1024  }
  0xcc   : > { %3638 = vsyncadd (%p3923_p5), %s377_s18, 4294966272  ;;  %p4377_p13 = scmp.ne.s32.totalorder %s4359_s12, 0 }
  0xce   : > { %3640 = dma.done.wait (%p4377_p13), [#allocation7], 256  }
  0xcf   : > { %3642 = vsyncadd (%p4377_p13), [#allocation7], 4294967040 }
  0xd0   : > { %3644 = dma.done.wait (%p4377_p13), [#allocation10], 1024  }
  0xd1   : > { %3646 = vsyncadd (%p4377_p13), [#allocation10], 4294966272 }
  0xd2   : > { %3648 = dma.done.wait (%p4377_p13), [#allocation13], 512  }
  0xd3   : > { %3650 = vsyncadd (%p4377_p13), [#allocation13], 4294966784  ;;  %s4014_s5 = scalar_lea.vmem [#allocation14], %s2652_s16  ;;  %p2659_p5 = scmp.ne.s32.totalorder %s3669_s30, 0 }
  0xd4   : > { %v447_v0 = vld [vmem:[#allocation8] sm:$0xff] (!%p2659_p5)  ;;  %vm448_vm0 = vcmask (!%p2659_p5), 261120  }
  0xd5   : > { %446 = sbr.rel (%p2659_p5) target bundleno = 220 (0xdc), region = 80  ;;  %449 = vst.msk [vmem:[#allocation2] sm:$0xff] (!%p2659_p5), %vm448_vm0, %v447_v0 }
  0xdc PF: > { %v452_v1 = vld [vmem:[#allocation9] sm:$0xff]  ;;  %v453_v2 = vld [vmem:[#allocation9 + $0x8] sm:$0xff]  ;;  %v3687_v4 = vmov 0.0|0.0   ;;  %v454_v7 = vld [vmem:[#allocation9 + $0x10] sm:$0xff]  ;;  %vm3688_vm1 = vmmov 0   ;;  %v3689_v12 = vmov 0.0  }
  0xdd   : > { %v456_v3 = vld [vmem:[#allocation11] sm:$0xff]  ;;  %3098 = vmatprep.subr.bf16.mxu0 %v3687_v4  ;;  %3104 = vmatprep.subr.bf16.mxu1 %v3687_v4  ;;  %v4019_v5 = vpack.c.bf16 %v453_v2, %v452_v1  ;;  %v457_v6 = vld [vmem:[#allocation11 + $0x8] sm:$0xff]  ;;  %v455_v8 = vld [vmem:[#allocation9 + $0x18] sm:$0xff]  ;;  %vm468_vm2 = vcmask 261120   ;;  %s3690_s21 = smov 64   ;;  %s3691_s23 = smov 96  }
  0xde   : > { %v4021_v9 = vpack.c.bf16 %v457_v6, %v456_v3  ;;  %v458_v10 = vld [vmem:[#allocation11 + $0x10] sm:$0xff]  ;;  %v459_v11 = vld [vmem:[#allocation11 + $0x18] sm:$0xff]  ;;  %2842 = vmatprep.mubr.msk.f32.mxu0 %vm3688_vm1, %v3689_v12  ;;  %2853 = vmatprep.mubr.msk.f32.mxu1 %vm3688_vm1, %v3689_v12  ;;  %v4028_v13 = vpack.c.bf16 %v455_v8, %v454_v7  ;;  %v465_v17 = vld [vmem:[#allocation2] sm:$0xff]  ;;  %s3692_s14 = smov 32   ;;  %s2713_s25 = sshll.u32 %s3669_s30, 10 }
  0xdf   : > { %3100 = vmatpush3.bf16.msra.mxu0 %v4019_v5  ;;  %v466_v14 = vld [vmem:[%s3996_s11] sm:$0xff]  ;;  %v4033_v15 = vpack.c.bf16 %v459_v11, %v458_v10  ;;  %v4053_v18 = vld [vmem:[%s4343_s6] ss:$0 sm:$0xff]  ;;  %v461_v35 = vld [vmem:[#allocation12] sm:$0xff]  ;;  %s2486_s4 = sshll.u32 %s4014_s5, 4  ;;  %s4285_s16 = scalar_lea.hbm %s4345_s8, %s2713_s25  ;;  %s4287_s4 = int_to_ptr.vmem [resolvable:$true] %s2486_s4 }
  0xe0   : > { %3106 = vmatpush3.bf16.msra.mxu1 %v4021_v9  ;;  %3101 = vmatprep.subr.bf16.mxu0 %v3687_v4  ;;  %v467_v16 = vmax.f32 %v466_v14, 0.0  ;;  %v4057_v24 = vld [vmem:[#allocation6] sm:$0xff]  ;;  %v462_v36 = vld [vmem:[#allocation12 + $0x8] sm:$0xff]  ;;  %v464_v39 = vld [vmem:[#allocation12 + $0x18] sm:$0xff]  ;;  %s2472_s18 = scalar_lea.sflag [#allocation5], %s3992_s2  ;;  %p4378_p4 = scmp.ne.s32.totalorder %s4373_s22, 0 }
  0xe1   : > { %3107 = vmatprep.subr.bf16.mxu1 %v3687_v4  ;;  %v463_v37 = vld [vmem:[#allocation12 + $0x10] sm:$0xff]  ;;  %v4061_v38 = vpack.c.bf16 %v462_v36, %v461_v35  ;;  %v2665_v43 = vld [vmem:[%s3996_s11 + $0x8] sm:$0xff]  ;;  %v4096_v53 = vld [vmem:[%s4340_s3] sm:$0xff]  ;;  %s3693_s30 = smov [#allocation14]  }
  0xe2   : > { %v4064_v40 = vpack.c.bf16 %v464_v39, %v463_v37  ;;  %v728_v44 = vmax.f32 %v2665_v43, 0.0  ;;  %v2671_v10 = vld [vmem:[%s3996_s11 + $0x10] sm:$0xff]  ;;  %s3587_s12 = sshll.u32 %s3693_s30, 4  ;;  %s3588_s12 = int_to_ptr.vmem [resolvable:$false] %s3587_s12 }
  0xe3   : > { %3103 = vmatpush3.bf16.msra.mxu0 %v4028_v13  ;;  %v977_v11 = vmax.f32 %v2671_v10, 0.0  ;;  %s3589_s13 = scalar_lea.vmem %s3588_s12, 2048  ;;  %p3590_p12 = scmp.lt.s32.totalorder %s4287_s4, %s3588_s12 }
  0xe4   : > { %3109 = vmatpush3.bf16.msra.mxu1 %v4033_v15  ;;  %3110 = vmatprep.subr.bf16.mxu0 %v3687_v4 }
  0xe5   : > { %3116 = vmatprep.subr.bf16.mxu1 %v3687_v4 }
  0xe6   : > { %2843 = vmatmul.mubr.msk.f32.vlgmr.msra.gmra.mrb[0].mxu0 %vm468_vm2, %v467_v16 }
  0xe7   : > { %2854 = vmatmul.mubr.msk.f32.vlgmr.msra.gmra.mrb[0].mxu1 %vm468_vm2, %v465_v17  ;;  %2864 = vmatprep.mubr.msk.f32.mxu0 %vm3688_vm1, %v3689_v12 }
  0xe8   : > { %3118 = vmatpush3.bf16.msra.mxu1 %v4019_v5  ;;  %2875 = vmatprep.mubr.msk.f32.mxu1 %vm3688_vm1, %v3689_v12 }
  0xe9   : > { %3119 = vmatprep.subr.bf16.mxu1 %v3687_v4  ;;  %3112 = vmatpush3.bf16.msra.mxu0 %v4061_v38 }
  0xea   : > { %3113 = vmatprep.subr.bf16.mxu0 %v3687_v4 }
  0xec   : > { %3121 = vmatpush3.bf16.msra.mxu1 %v4028_v13 }
  0xed   : > { %3128 = vmatprep.subr.bf16.mxu1 %v3687_v4  ;;  %3115 = vmatpush3.bf16.msra.mxu0 %v4064_v40 }
  0xee   : > { %3122 = vmatprep.subr.bf16.mxu0 %v3687_v4 }
  0xef   : > { %2876 = vmatmul.mubr.msk.f32.vlgmr.msra.gmra.mrb[2].mxu1 %vm468_vm2, %v728_v44  ;;  %v2677_v44 = vld [vmem:[%s3996_s11 + $0x18] sm:$0xff] }
  0xf0   : > { %3130 = vmatpush3.bf16.msra.mxu1 %v4061_v38  ;;  %2897 = vmatprep.mubr.msk.f32.mxu1 %vm3688_vm1, %v3689_v12 }
  0xf1   : > { %3131 = vmatprep.subr.bf16.mxu1 %v3687_v4 }
  0xf4   : > { %3133 = vmatpush3.bf16.msra.mxu1 %v4064_v40 }
  0xf5   : > { %3140 = vmatprep.subr.bf16.mxu1 %v3687_v4 }
 0x1b9   : > { %v538_v19 = vpop.f32.mrb[0].mxu0 }
 0x1ba   : > { %v617_v20 = vpop.f32.mrb[0].mxu1  ;;  %v2844_v21 = vpop.f32.mrb[1].mxu0  ;;  %v539_v25 = vadd.f32 %v538_v19, %v4057_v24 }
 0x1bb   : > { %v618_v22 = vadd.f32 %v4053_v18, %v617_v20  ;;  %v2855_v23 = vpop.f32.mrb[1].mxu1 }
 0x1bd   : > { %629 = vrot.lane.b32.xlu0 %v618_v22, %s3690_s21  ;;  %v621_v26 = vadd.f32 %v618_v22, %v539_v25 }
 0x1bf   : > { %v2663_v27 = vmul.f32 -1.442695, %v621_v26 }
 0x1c1   : > { %3365 = vpow2.f32 %v2663_v27 }
 0x1c2   : > { %v798_v51 = vpop.f32.mrb[2].mxu1 }
 0x1c3   : > { %v2877_v52 = vpop.f32.mrb[3].mxu1  ;;  %v799_v60 = vadd.f32 %v798_v51, %v4057_v24 }
 0x1cb   : > { %v3366_v28 = vpop.eup %3365 }
 0x1cc   : > { %v625_v29 = vadd.f32 1.0, %v3366_v28 }
 0x1ce   : > { %3367 = vrcp.f32 %v625_v29 }
 0x1d8   : > { %v3368_v30 = vpop.eup %3367 }
 0x1d9   : > { %v639_v45 = vsub.f32 1.0, %v3368_v30 }
 0x22f   : > { %v630_v31 = vpop.permute.xlu0 %629 }
 0x230   : > { %v632_v32 = vmul.f32 %v3368_v30, %v630_v31 }
 0x232   : > { %634 = vrot.lane.b32.xlu0 %v632_v32, %s3690_s21 }
 0x2a4   : > { %v635_v33 = vpop.permute.xlu0 %634 }
 0x2a5   : > { %v637_v34 = vadd.f32 %v635_v33, %v539_v25 }
 0x2a7   : > { %3369 = vtanh.f32 %v637_v34 }
 0x2b1   : > { %v3370_v41 = vpop.eup %3369 }
 0x2b2   : > { %641 = vrot.lane.b32.xlu1 %v3370_v41, %s3691_s23 }
 0x2b6   : > { %645 = vrot.lane.b32.xlu1 %v465_v17, %s3692_s14 }
 0x324   : > { %v642_v42 = vpop.permute.xlu1 %641 }
 0x325   : > { %v644_v47 = vmul.f32 %v642_v42, %v639_v45  ;;  %v1226_v45 = vmax.f32 %v2677_v44, 0.0 }
 0x328   : > { %v646_v46 = vpop.permute.xlu1 %645 }
 0x329   : > { %v648_v48 = vmul.f32 %v3368_v30, %v646_v46 }
 0x32b   : > { %v649_v49 = vadd.f32 %v648_v48, %v644_v47 }
 0x32d   : > { %651 = vrot.lane.b32.xlu0 %v649_v49, %s3691_s23 }
 0x39f   : > { %v652_v50 = vpop.permute.xlu0 %651 }
 0x3a0   : > { %2865 = vmatmul.mubr.msk.f32.vlgmr.msra.gmra.mrb[2].mxu0 %vm468_vm2, %v652_v50 }
 0x3a1   : > { %3124 = vmatpush3.bf16.msra.mxu0 %v4021_v9  ;;  %2886 = vmatprep.mubr.msk.f32.mxu0 %vm3688_vm1, %v3689_v12 }
 0x3a2   : > { %3125 = vmatprep.subr.bf16.mxu0 %v3687_v4 }
 0x3a5   : > { %3127 = vmatpush3.bf16.msra.mxu0 %v4033_v15 }
 0x3a6   : > { %3134 = vmatprep.subr.bf16.mxu0 %v3687_v4 }
 0x3a8   : > { %2887 = vmatmul.mubr.msk.f32.vlgmr.msra.gmra.mrb[4].mxu0 %vm468_vm2, %v652_v50 }
 0x3a9   : > { %3136 = vmatpush3.bf16.msra.mxu0 %v4019_v5  ;;  %2908 = vmatprep.mubr.msk.f32.mxu0 %vm3688_vm1, %v3689_v12 }
 0x3aa   : > { %3137 = vmatprep.subr.bf16.mxu0 %v3687_v4 }
 0x3ad   : > { %3139 = vmatpush3.bf16.msra.mxu0 %v4028_v13 }
 0x3ae   : > { %3146 = vmatprep.subr.bf16.mxu0 %v3687_v4 }
 0x3b0   : > { %2909 = vmatmul.mubr.msk.f32.vlgmr.msra.gmra.mrb[6].mxu0 %vm468_vm2, %v977_v11  ;;  %v2683_v11 = vld [vmem:[%s3996_s11 + $0x20] sm:$0xff] }
 0x3b1   : > { %3148 = vmatpush3.bf16.msra.mxu0 %v4061_v38  ;;  %2930 = vmatprep.mubr.msk.f32.mxu0 %vm3688_vm1, %v3689_v12 }
 0x3b2   : > { %3149 = vmatprep.subr.bf16.mxu0 %v3687_v4 }
 0x3b5   : > { %3151 = vmatpush3.bf16.msra.mxu0 %v4064_v40 }
 0x3b6   : > { %3158 = vmatprep.subr.bf16.mxu0 %v3687_v4 }
 0x473   : > { %v721_v54 = vpop.f32.mrb[2].mxu0 }
 0x474   : > { %v722_v55 = vadd.f32 %v721_v54, %v4096_v53  ;;  %v2866_v56 = vpop.f32.mrb[3].mxu0 }
 0x476   : > { %725 = vst [vmem:[%s4014_s5] sm:$0xff] %v722_v55 }
 0x47b   : > { %v868_v57 = vpop.f32.mrb[4].mxu0 }
 0x47c   : > { %v869_v58 = vadd.f32 %v4053_v18, %v868_v57  ;;  %v2888_v59 = vpop.f32.mrb[5].mxu0 }
 0x47e   : > { %880 = vrot.lane.b32.xlu1 %v869_v58, %s3690_s21  ;;  %v872_v61 = vadd.f32 %v869_v58, %v799_v60 }
 0x480   : > { %v2668_v62 = vmul.f32 -1.442695, %v872_v61 }
 0x482   : > { %3371 = vpow2.f32 %v2668_v62 }
 0x483   : > { %v1047_v22 = vpop.f32.mrb[6].mxu0 }
 0x484   : > { %v2910_v23 = vpop.f32.mrb[7].mxu0  ;;  %v1048_v31 = vadd.f32 %v1047_v22, %v4057_v24 }
 0x48c   : > { %v3372_v63 = vpop.eup %3371 }
 0x48d   : > { %v876_v0 = vadd.f32 1.0, %v3372_v63 }
 0x48f   : > { %3373 = vrcp.f32 %v876_v0 }
 0x499   : > { %v3374_v1 = vpop.eup %3373 }
 0x49a   : > { %v890_v14 = vsub.f32 1.0, %v3374_v1  ;;  %v896_v17 = vmul.f32 %v3374_v1, %v649_v49 }
 0x4f0   : > { %v881_v2 = vpop.permute.xlu1 %880 }
 0x4f1   : > { %v883_v3 = vmul.f32 %v3374_v1, %v881_v2 }
 0x4f3   : > { %885 = vrot.lane.b32.xlu0 %v883_v3, %s3690_s21 }
 0x565   : > { %v886_v6 = vpop.permute.xlu0 %885 }
 0x566   : > { %v888_v7 = vadd.f32 %v886_v6, %v799_v60 }
 0x568   : > { %3375 = vtanh.f32 %v888_v7 }
 0x572   : > { %v3376_v8 = vpop.eup %3375 }
 0x573   : > { %892 = vrot.lane.b32.xlu1 %v3376_v8, %s3691_s23 }
 0x5e5   : > { %v893_v16 = vpop.permute.xlu1 %892 }
 0x5e6   : > { %v895_v19 = vmul.f32 %v893_v16, %v890_v14  ;;  %v1475_v14 = vmax.f32 %v2683_v11, 0.0 }
 0x5e8   : > { %v897_v20 = vadd.f32 %v896_v17, %v895_v19 }
 0x5ea   : > { %899 = vrot.lane.b32.xlu0 %v897_v20, %s3691_s23 }
 0x65c   : > { %v900_v21 = vpop.permute.xlu0 %899 }
 0x65d   : > { %2898 = vmatmul.mubr.msk.f32.vlgmr.msra.gmra.mrb[4].mxu1 %vm468_vm2, %v900_v21 }
 0x65e   : > { %3142 = vmatpush3.bf16.msra.mxu1 %v4021_v9  ;;  %2919 = vmatprep.mubr.msk.f32.mxu1 %vm3688_vm1, %v3689_v12 }
 0x65f   : > { %3143 = vmatprep.subr.bf16.mxu1 %v3687_v4 }
 0x662   : > { %3145 = vmatpush3.bf16.msra.mxu1 %v4033_v15 }
 0x663   : > { %3152 = vmatprep.subr.bf16.mxu1 %v3687_v4 }
 0x665   : > { %2920 = vmatmul.mubr.msk.f32.vlgmr.msra.gmra.mrb[6].mxu1 %vm468_vm2, %v900_v21 }
 0x666   : > { %3154 = vmatpush3.bf16.msra.mxu1 %v4019_v5  ;;  %2941 = vmatprep.mubr.msk.f32.mxu1 %vm3688_vm1, %v3689_v12 }
 0x667   : > { %3155 = vmatprep.subr.bf16.mxu1 %v3687_v4 }
 0x66a   : > { %3157 = vmatpush3.bf16.msra.mxu1 %v4028_v13 }
 0x66b   : > { %3164 = vmatprep.subr.bf16.mxu1 %v3687_v4 }
 0x66d   : > { %2942 = vmatmul.mubr.msk.f32.vlgmr.msra.gmra.mrb[8].mxu1 %vm468_vm2, %v1226_v45  ;;  %v2689_v45 = vld [vmem:[%s3996_s11 + $0x28] sm:$0xff] }
 0x66e   : > { %3166 = vmatpush3.bf16.msra.mxu1 %v4061_v38  ;;  %2963 = vmatprep.mubr.msk.f32.mxu1 %vm3688_vm1, %v3689_v12 }
 0x66f   : > { %3167 = vmatprep.subr.bf16.mxu1 %v3687_v4 }
 0x672   : > { %3169 = vmatpush3.bf16.msra.mxu1 %v4064_v40 }
 0x673   : > { %3176 = vmatprep.subr.bf16.mxu1 %v3687_v4 }
 0x730   : > { %v969_v25 = vpop.f32.mrb[4].mxu1 }
 0x731   : > { %v970_v26 = vadd.f32 %v969_v25, %v4096_v53  ;;  %v2899_v27 = vpop.f32.mrb[5].mxu1 }
 0x733   : > { %2670 = vst [vmem:[%s4014_s5 + $0x8] sm:$0xff] %v970_v26 }
 0x738   : > { %v1117_v28 = vpop.f32.mrb[6].mxu1 }
 0x739   : > { %v1118_v29 = vadd.f32 %v4053_v18, %v1117_v28  ;;  %v2921_v30 = vpop.f32.mrb[7].mxu1 }
 0x73b   : > { %1129 = vrot.lane.b32.xlu1 %v1118_v29, %s3690_s21  ;;  %v1121_v32 = vadd.f32 %v1118_v29, %v1048_v31 }
 0x73d   : > { %v2674_v33 = vmul.f32 -1.442695, %v1121_v32 }
 0x73f   : > { %3377 = vpow2.f32 %v2674_v33 }
 0x740   : > { %v1296_v52 = vpop.f32.mrb[8].mxu1 }
 0x741   : > { %v2943_v54 = vpop.f32.mrb[9].mxu1  ;;  %v1297_v61 = vadd.f32 %v1296_v52, %v4057_v24 }
 0x749   : > { %v3378_v34 = vpop.eup %3377 }
 0x74a   : > { %v1125_v35 = vadd.f32 1.0, %v3378_v34 }
 0x74c   : > { %3379 = vrcp.f32 %v1125_v35 }
 0x756   : > { %v3380_v36 = vpop.eup %3379 }
 0x757   : > { %v1139_v46 = vsub.f32 1.0, %v3380_v36  ;;  %v1145_v48 = vmul.f32 %v3380_v36, %v897_v20 }
 0x7ad   : > { %v1130_v37 = vpop.permute.xlu1 %1129 }
 0x7ae   : > { %v1132_v39 = vmul.f32 %v3380_v36, %v1130_v37 }
 0x7b0   : > { %1134 = vrot.lane.b32.xlu0 %v1132_v39, %s3690_s21 }
 0x822   : > { %v1135_v41 = vpop.permute.xlu0 %1134 }
 0x823   : > { %v1137_v42 = vadd.f32 %v1135_v41, %v1048_v31 }
 0x825   : > { %3381 = vtanh.f32 %v1137_v42 }
 0x82f   : > { %v3382_v43 = vpop.eup %3381 }
 0x830   : > { %1141 = vrot.lane.b32.xlu1 %v3382_v43, %s3691_s23 }
 0x8a2   : > { %v1142_v47 = vpop.permute.xlu1 %1141 }
 0x8a3   : > { %v1144_v49 = vmul.f32 %v1142_v47, %v1139_v46  ;;  %v1724_v46 = vmax.f32 %v2689_v45, 0.0 }
 0x8a5   : > { %v1146_v50 = vadd.f32 %v1145_v48, %v1144_v49 }
 0x8a7   : > { %1148 = vrot.lane.b32.xlu0 %v1146_v50, %s3691_s23 }
 0x919   : > { %v1149_v51 = vpop.permute.xlu0 %1148 }
 0x91a   : > { %2931 = vmatmul.mubr.msk.f32.vlgmr.msra.gmra.mrb[8].mxu0 %vm468_vm2, %v1149_v51 }
 0x91b   : > { %3160 = vmatpush3.bf16.msra.mxu0 %v4021_v9  ;;  %2952 = vmatprep.mubr.msk.f32.mxu0 %vm3688_vm1, %v3689_v12 }
 0x91c   : > { %3161 = vmatprep.subr.bf16.mxu0 %v3687_v4 }
 0x91f   : > { %3163 = vmatpush3.bf16.msra.mxu0 %v4033_v15 }
 0x920   : > { %3170 = vmatprep.subr.bf16.mxu0 %v3687_v4 }
 0x922   : > { %2953 = vmatmul.mubr.msk.f32.vlgmr.msra.gmra.mrb[10].mxu0 %vm468_vm2, %v1149_v51 }
 0x923   : > { %3172 = vmatpush3.bf16.msra.mxu0 %v4019_v5  ;;  %2974 = vmatprep.mubr.msk.f32.mxu0 %vm3688_vm1, %v3689_v12 }
 0x924   : > { %3173 = vmatprep.subr.bf16.mxu0 %v3687_v4 }
 0x927   : > { %3175 = vmatpush3.bf16.msra.mxu0 %v4028_v13 }
 0x928   : > { %3182 = vmatprep.subr.bf16.mxu0 %v3687_v4 }
 0x92a   : > { %2975 = vmatmul.mubr.msk.f32.vlgmr.msra.gmra.mrb[12].mxu0 %vm468_vm2, %v1475_v14  ;;  %v2695_v14 = vld [vmem:[%s3996_s11 + $0x30] sm:$0xff] }
 0x92b   : > { %3184 = vmatpush3.bf16.msra.mxu0 %v4061_v38  ;;  %2996 = vmatprep.mubr.msk.f32.mxu0 %vm3688_vm1, %v3689_v12 }
 0x92c   : > { %3185 = vmatprep.subr.bf16.mxu0 %v3687_v4 }
 0x92f   : > { %3187 = vmatpush3.bf16.msra.mxu0 %v4064_v40 }
 0x930   : > { %3194 = vmatprep.subr.bf16.mxu0 %v3687_v4 }
 0x9ed   : > { %v1218_v55 = vpop.f32.mrb[8].mxu0 }
 0x9ee   : > { %v1219_v56 = vadd.f32 %v1218_v55, %v4096_v53  ;;  %v2932_v57 = vpop.f32.mrb[9].mxu0 }
 0x9f0   : > { %2676 = vst [vmem:[%s4014_s5 + $0x10] sm:$0xff] %v1219_v56 }
 0x9f5   : > { %v1366_v58 = vpop.f32.mrb[10].mxu0 }
 0x9f6   : > { %v1367_v59 = vadd.f32 %v4053_v18, %v1366_v58  ;;  %v2954_v60 = vpop.f32.mrb[11].mxu0 }
 0x9f8   : > { %1378 = vrot.lane.b32.xlu1 %v1367_v59, %s3690_s21  ;;  %v1370_v62 = vadd.f32 %v1367_v59, %v1297_v61 }
 0x9fa   : > { %v2680_v63 = vmul.f32 -1.442695, %v1370_v62 }
 0x9fc   : > { %3383 = vpow2.f32 %v2680_v63 }
 0x9fd   : > { %v1545_v23 = vpop.f32.mrb[12].mxu0 }
 0x9fe   : > { %v2976_v25 = vpop.f32.mrb[13].mxu0  ;;  %v1546_v32 = vadd.f32 %v1545_v23, %v4057_v24 }
 0xa06   : > { %v3384_v0 = vpop.eup %3383 }
 0xa07   : > { %v1374_v1 = vadd.f32 1.0, %v3384_v0 }
 0xa09   : > { %3385 = vrcp.f32 %v1374_v1 }
 0xa13   : > { %v3386_v2 = vpop.eup %3385 }
 0xa14   : > { %v1388_v16 = vsub.f32 1.0, %v3386_v2  ;;  %v1394_v19 = vmul.f32 %v3386_v2, %v1146_v50 }
 0xa6a   : > { %v1379_v3 = vpop.permute.xlu1 %1378 }
 0xa6b   : > { %v1381_v6 = vmul.f32 %v3386_v2, %v1379_v3 }
 0xa6d   : > { %1383 = vrot.lane.b32.xlu0 %v1381_v6, %s3690_s21 }
 0xadf   : > { %v1384_v7 = vpop.permute.xlu0 %1383 }
 0xae0   : > { %v1386_v8 = vadd.f32 %v1384_v7, %v1297_v61 }
 0xae2   : > { %3387 = vtanh.f32 %v1386_v8 }
 0xaec   : > { %v3388_v10 = vpop.eup %3387 }
 0xaed   : > { %1390 = vrot.lane.b32.xlu1 %v3388_v10, %s3691_s23 }
 0xb5f   : > { %v1391_v17 = vpop.permute.xlu1 %1390 }
 0xb60   : > { %v1393_v20 = vmul.f32 %v1391_v17, %v1388_v16  ;;  %v1973_v16 = vmax.f32 %v2695_v14, 0.0 }
 0xb62   : > { %v1395_v21 = vadd.f32 %v1394_v19, %v1393_v20 }
 0xb64   : > { %1397 = vrot.lane.b32.xlu0 %v1395_v21, %s3691_s23 }
 0xbd6   : > { %v1398_v22 = vpop.permute.xlu0 %1397 }
 0xbd7   : > { %2964 = vmatmul.mubr.msk.f32.vlgmr.msra.gmra.mrb[10].mxu1 %vm468_vm2, %v1398_v22 }
 0xbd8   : > { %3178 = vmatpush3.bf16.msra.mxu1 %v4021_v9  ;;  %2985 = vmatprep.mubr.msk.f32.mxu1 %vm3688_vm1, %v3689_v12 }
 0xbd9   : > { %3179 = vmatprep.subr.bf16.mxu1 %v3687_v4 }
 0xbdc   : > { %3181 = vmatpush3.bf16.msra.mxu1 %v4033_v15 }
 0xbdd   : > { %3188 = vmatprep.subr.bf16.mxu1 %v3687_v4 }
 0xbdf   : > { %2986 = vmatmul.mubr.msk.f32.vlgmr.msra.gmra.mrb[12].mxu1 %vm468_vm2, %v1398_v22 }
 0xbe0   : > { %3190 = vmatpush3.bf16.msra.mxu1 %v4019_v5  ;;  %3007 = vmatprep.mubr.msk.f32.mxu1 %vm3688_vm1, %v3689_v12 }
 0xbe1   : > { %3191 = vmatprep.subr.bf16.mxu1 %v3687_v4 }
 0xbe4   : > { %3193 = vmatpush3.bf16.msra.mxu1 %v4028_v13 }
 0xbe5   : > { %3200 = vmatprep.subr.bf16.mxu1 %v3687_v4 }
 0xbe7   : > { %3008 = vmatmul.mubr.msk.f32.vlgmr.msra.gmra.mrb[14].mxu1 %vm468_vm2, %v1724_v46 }
 0xbe8   : > { %3202 = vmatpush3.bf16.msra.mxu1 %v4061_v38  ;;  %3029 = vmatprep.mubr.msk.f32.mxu1 %vm3688_vm1, %v3689_v12 }
 0xbe9   : > { %3203 = vmatprep.subr.bf16.mxu1 %v3687_v4 }
 0xbec   : > { %3205 = vmatpush3.bf16.msra.mxu1 %v4064_v40 }
 0xbed   : > { %3212 = vmatprep.subr.bf16.mxu1 %v3687_v4 }
 0xcaa   : > { %v1467_v26 = vpop.f32.mrb[10].mxu1 }
 0xcab   : > { %v1468_v27 = vadd.f32 %v1467_v26, %v4096_v53  ;;  %v2965_v28 = vpop.f32.mrb[11].mxu1 }
 0xcad   : > { %2682 = vst [vmem:[%s4014_s5 + $0x18] sm:$0xff] %v1468_v27 }
 0xcb2   : > { %v1615_v29 = vpop.f32.mrb[12].mxu1 }
 0xcb3   : > { %v1616_v30 = vadd.f32 %v4053_v18, %v1615_v29  ;;  %v2987_v31 = vpop.f32.mrb[13].mxu1 }
 0xcb5   : > { %1627 = vrot.lane.b32.xlu1 %v1616_v30, %s3690_s21  ;;  %v1619_v33 = vadd.f32 %v1616_v30, %v1546_v32 }
 0xcb7   : > { %v2686_v34 = vmul.f32 -1.442695, %v1619_v33 }
 0xcb9   : > { %3389 = vpow2.f32 %v2686_v34 }
 0xcba   : > { %v1794_v54 = vpop.f32.mrb[14].mxu1 }
 0xcbb   : > { %v3009_v55 = vpop.f32.mrb[15].mxu1  ;;  %v1795_v62 = vadd.f32 %v1794_v54, %v4057_v24 }
 0xcc3   : > { %v3390_v35 = vpop.eup %3389 }
 0xcc4   : > { %v1623_v36 = vadd.f32 1.0, %v3390_v35 }
 0xcc6   : > { %3391 = vrcp.f32 %v1623_v36 }
 0xcd0   : > { %v3392_v37 = vpop.eup %3391 }
 0xcd1   : > { %v1637_v47 = vsub.f32 1.0, %v3392_v37  ;;  %v1643_v49 = vmul.f32 %v3392_v37, %v1395_v21 }
 0xd27   : > { %v1628_v39 = vpop.permute.xlu1 %1627 }
 0xd28   : > { %v1630_v41 = vmul.f32 %v3392_v37, %v1628_v39 }
 0xd2a   : > { %1632 = vrot.lane.b32.xlu0 %v1630_v41, %s3690_s21 }
 0xd9c   : > { %v1633_v42 = vpop.permute.xlu0 %1632 }
 0xd9d   : > { %v1635_v43 = vadd.f32 %v1633_v42, %v1546_v32 }
 0xd9f   : > { %3393 = vtanh.f32 %v1635_v43 }
 0xda9   : > { %v3394_v44 = vpop.eup %3393 }
 0xdaa   : > { %1639 = vrot.lane.b32.xlu1 %v3394_v44, %s3691_s23  ;;  %v2701_v44 = vld [vmem:[%s3996_s11 + $0x38] sm:$0xff]  ;;  %s3583_s11 = scalar_lea.vmem %s4287_s4, 1024 }
 0xdab   : > { %v2222_v45 = vmax.f32 %v2701_v44, 0.0  ;;  %p3584_p2 = scmp.ne.s32.totalorder %s4287_s4, %s3583_s11  ;;  %p3591_p0 = scmp.lt.s32.totalorder %s3589_s13, %s3583_s11 }
 0xdad   : > { %p3585_p9 = pnand %p3584_p2, %p4378_p4  ;;  %p3592_p7 = por %p3591_p0, %p3590_p12 }
 0xdaf   : > { %p3586_p11 = pneg %p3585_p9 }
 0xdb1   : > { %p3593_p8 = pnand %p3592_p7, %p3586_p11 }
 0xe1c   : > { %v1640_v48 = vpop.permute.xlu1 %1639 }
 0xe1d   : > { %v1642_v50 = vmul.f32 %v1640_v48, %v1637_v47 }
 0xe1f   : > { %v1644_v51 = vadd.f32 %v1643_v49, %v1642_v50 }
 0xe21   : > { %1646 = vrot.lane.b32.xlu0 %v1644_v51, %s3691_s23 }
 0xe93   : > { %v1647_v52 = vpop.permute.xlu0 %1646 }
 0xe94   : > { %2997 = vmatmul.mubr.msk.f32.vlgmr.msra.gmra.mrb[14].mxu0 %vm468_vm2, %v1647_v52 }
 0xe95   : > { %3196 = vmatpush3.bf16.msra.mxu0 %v4021_v9  ;;  %3018 = vmatprep.mubr.msk.f32.mxu0 %vm3688_vm1, %v3689_v12 }
 0xe96   : > { %3197 = vmatprep.subr.bf16.mxu0 %v3687_v4 }
 0xe99   : > { %3199 = vmatpush3.bf16.msra.mxu0 %v4033_v15 }
 0xe9a   : > { %3206 = vmatprep.subr.bf16.mxu0 %v3687_v4 }
 0xe9c   : > { %3019 = vmatmul.mubr.msk.f32.vlgmr.msra.gmra.mrb[16].mxu0 %vm468_vm2, %v1647_v52 }
 0xe9d   : > { %3208 = vmatpush3.bf16.msra.mxu0 %v4019_v5  ;;  %3040 = vmatprep.mubr.msk.f32.mxu0 %vm3688_vm1, %v3689_v12 }
 0xe9e   : > { %3209 = vmatprep.subr.bf16.mxu0 %v3687_v4 }
 0xea1   : > { %3211 = vmatpush3.bf16.msra.mxu0 %v4028_v13 }
 0xea2   : > { %3218 = vmatprep.subr.bf16.mxu0 %v3687_v4 }
 0xea4   : > { %3041 = vmatmul.mubr.msk.f32.vlgmr.msra.gmra.mrb[18].mxu0 %vm468_vm2, %v1973_v16 }
 0xea5   : > { %3220 = vmatpush3.bf16.msra.mxu0 %v4061_v38  ;;  %3062 = vmatprep.mubr.msk.f32.mxu0 %vm3688_vm1, %v3689_v12 }
 0xea6   : > { %3221 = vmatprep.subr.bf16.mxu0 %v3687_v4 }
 0xea9   : > { %3223 = vmatpush3.bf16.msra.mxu0 %v4064_v40 }
 0xeaa   : > { %3230 = vmatprep.subr.bf16.mxu0 %v3687_v4 }
 0xf67   : > { %v1716_v56 = vpop.f32.mrb[14].mxu0 }
 0xf68   : > { %v1717_v57 = vadd.f32 %v1716_v56, %v4096_v53  ;;  %v2998_v58 = vpop.f32.mrb[15].mxu0 }
 0xf6a   : > { %2688 = vst [vmem:[%s4014_s5 + $0x20] sm:$0xff] %v1717_v57 }
 0xf6f   : > { %v1864_v59 = vpop.f32.mrb[16].mxu0 }
 0xf70   : > { %v1865_v60 = vadd.f32 %v4053_v18, %v1864_v59  ;;  %v3020_v61 = vpop.f32.mrb[17].mxu0 }
 0xf72   : > { %1876 = vrot.lane.b32.xlu1 %v1865_v60, %s3690_s21  ;;  %v1868_v63 = vadd.f32 %v1865_v60, %v1795_v62 }
 0xf74   : > { %v2692_v0 = vmul.f32 -1.442695, %v1868_v63 }
 0xf76   : > { %3395 = vpow2.f32 %v2692_v0 }
 0xf77   : > { %v2043_v25 = vpop.f32.mrb[18].mxu0 }
 0xf78   : > { %v3042_v26 = vpop.f32.mrb[19].mxu0  ;;  %v2044_v32 = vadd.f32 %v2043_v25, %v4057_v24 }
 0xf80   : > { %v3396_v1 = vpop.eup %3395 }
 0xf81   : > { %v1872_v2 = vadd.f32 1.0, %v3396_v1 }
 0xf83   : > { %3397 = vrcp.f32 %v1872_v2 }
 0xf8d   : > { %v3398_v3 = vpop.eup %3397 }
 0xf8e   : > { %v1886_v17 = vsub.f32 1.0, %v3398_v3  ;;  %v1892_v20 = vmul.f32 %v3398_v3, %v1644_v51 }
 0xfe4   : > { %v1877_v6 = vpop.permute.xlu1 %1876 }
 0xfe5   : > { %v1879_v7 = vmul.f32 %v3398_v3, %v1877_v6 }
 0xfe7   : > { %1881 = vrot.lane.b32.xlu0 %v1879_v7, %s3690_s21 }
0x1059   : > { %v1882_v8 = vpop.permute.xlu0 %1881 }
0x105a   : > { %v1884_v10 = vadd.f32 %v1882_v8, %v1795_v62 }
0x105c   : > { %3399 = vtanh.f32 %v1884_v10 }
0x1066   : > { %v3400_v11 = vpop.eup %3399 }
0x1067   : > { %1888 = vrot.lane.b32.xlu1 %v3400_v11, %s3691_s23 }
0x10d9   : > { %v1889_v19 = vpop.permute.xlu1 %1888 }
0x10da   : > { %v1891_v21 = vmul.f32 %v1889_v19, %v1886_v17 }
0x10dc   : > { %v1893_v22 = vadd.f32 %v1892_v20, %v1891_v21 }
0x10de   : > { %1895 = vrot.lane.b32.xlu0 %v1893_v22, %s3691_s23 }
0x1150   : > { %v1896_v23 = vpop.permute.xlu0 %1895 }
0x1151   : > { %3030 = vmatmul.mubr.msk.f32.vlgmr.msra.gmra.mrb[16].mxu1 %vm468_vm2, %v1896_v23 }
0x1152   : > { %3214 = vmatpush3.bf16.msra.mxu1 %v4021_v9  ;;  %3051 = vmatprep.mubr.msk.f32.mxu1 %vm3688_vm1, %v3689_v12 }
0x1153   : > { %3215 = vmatprep.subr.bf16.mxu1 %v3687_v4 }
0x1156   : > { %3217 = vmatpush3.bf16.msra.mxu1 %v4033_v15 }
0x1157   : > { %3224 = vmatprep.subr.bf16.mxu1 %v3687_v4 }
0x1159   : > { %3052 = vmatmul.mubr.msk.f32.vlgmr.msra.gmra.mrb[18].mxu1 %vm468_vm2, %v1896_v23 }
0x115a   : > { %3226 = vmatpush3.bf16.msra.mxu1 %v4019_v5  ;;  %3073 = vmatprep.mubr.msk.f32.mxu1 %vm3688_vm1, %v3689_v12 }
0x115b   : > { %3227 = vmatprep.subr.bf16.mxu1 %v3687_v4 }
0x115e   : > { %3229 = vmatpush3.bf16.msra.mxu1 %v4028_v13 }
0x115f   : > { %3236 = vmatprep.subr.bf16.mxu1 %v3687_v4 }
0x1161   : > { %3074 = vmatmul.mubr.msk.f32.vlgmr.msra.gmra.mrb[20].mxu1 %vm468_vm2, %v2222_v45 }
0x1162   : > { %3238 = vmatpush3.bf16.msra.mxu1 %v4061_v38  ;;  %3095 = vmatprep.mubr.msk.f32.mxu1 %vm3688_vm1, %v3689_v12 }
0x1163   : > { %3239 = vmatprep.subr.bf16.mxu1 %v3687_v4 }
0x1166   : > { %3241 = vmatpush3.bf16.msra.mxu1 %v4064_v40 }
0x1224   : > { %v1965_v27 = vpop.f32.mrb[16].mxu1 }
0x1225   : > { %v1966_v28 = vadd.f32 %v1965_v27, %v4096_v53  ;;  %v3031_v29 = vpop.f32.mrb[17].mxu1 }
0x1227   : > { %2694 = vst [vmem:[%s4014_s5 + $0x28] sm:$0xff] %v1966_v28 }
0x122c   : > { %v2113_v30 = vpop.f32.mrb[18].mxu1 }
0x122d   : > { %v2114_v31 = vadd.f32 %v4053_v18, %v2113_v30  ;;  %v3053_v5 = vpop.f32.mrb[19].mxu1 }
0x122f   : > { %2125 = vrot.lane.b32.xlu1 %v2114_v31, %s3690_s21  ;;  %v2117_v33 = vadd.f32 %v2114_v31, %v2044_v32 }
0x1231   : > { %v2698_v13 = vmul.f32 -1.442695, %v2117_v33 }
0x1233   : > { %3401 = vpow2.f32 %v2698_v13 }
0x1234   : > { %v2292_v38 = vpop.f32.mrb[20].mxu1 }
0x1235   : > { %v3075_v52 = vpop.f32.mrb[21].mxu1 }
0x123d   : > { %v3402_v34 = vpop.eup %3401 }
0x123e   : > { %v2121_v35 = vadd.f32 1.0, %v3402_v34 }
0x1240   : > { %3403 = vrcp.f32 %v2121_v35 }
0x124a   : > { %v3404_v36 = vpop.eup %3403 }
0x124b   : > { %v2135_v46 = vsub.f32 1.0, %v3404_v36  ;;  %v2141_v48 = vmul.f32 %v3404_v36, %v1893_v22 }
0x12a1   : > { %v2126_v37 = vpop.permute.xlu1 %2125 }
0x12a2   : > { %v2128_v39 = vmul.f32 %v3404_v36, %v2126_v37 }
0x12a4   : > { %2130 = vrot.lane.b32.xlu0 %v2128_v39, %s3690_s21 }
0x1316   : > { %v2131_v41 = vpop.permute.xlu0 %2130 }
0x1317   : > { %v2133_v42 = vadd.f32 %v2131_v41, %v2044_v32 }
0x1319   : > { %3405 = vtanh.f32 %v2133_v42 }
0x1323   : > { %v3406_v43 = vpop.eup %3405 }
0x1324   : > { %2137 = vrot.lane.b32.xlu1 %v3406_v43, %s3691_s23 }
0x1396   : > { %v2138_v47 = vpop.permute.xlu1 %2137 }
0x1397   : > { %v2140_v49 = vmul.f32 %v2138_v47, %v2135_v46 }
0x1399   : > { %v2142_v50 = vadd.f32 %v2141_v48, %v2140_v49 }
0x139b   : > { %2144 = vrot.lane.b32.xlu0 %v2142_v50, %s3691_s23 }
0x140d   : > { %v2145_v51 = vpop.permute.xlu0 %2144 }
0x140e   : > { %3063 = vmatmul.mubr.msk.f32.vlgmr.msra.gmra.mrb[20].mxu0 %vm468_vm2, %v2145_v51 }
0x140f   : > { %3232 = vmatpush3.bf16.msra.mxu0 %v4021_v9  ;;  %3084 = vmatprep.mubr.msk.f32.mxu0 %vm3688_vm1, %v3689_v12  ;;  %v2293_v12 = vadd.f32 %v2292_v38, %v4057_v24 }
0x1410   : > { %3233 = vmatprep.subr.bf16.mxu0 %v3687_v4 }
0x1413   : > { %3235 = vmatpush3.bf16.msra.mxu0 %v4033_v15 }
0x1416   : > { %3085 = vmatmul.mubr.msk.f32.vlgmr.msra.gmra.mrb[22].mxu0 %vm468_vm2, %v2145_v51 }
0x14e1   : > { %v2214_v54 = vpop.f32.mrb[20].mxu0 }
0x14e2   : > { %v2215_v55 = vadd.f32 %v2214_v54, %v4096_v53  ;;  %v3064_v40 = vpop.f32.mrb[21].mxu0 }
0x14e4   : > { %2700 = vst [vmem:[%s4014_s5 + $0x30] sm:$0xff] %v2215_v55 }
0x14e9   : > { %v2362_v56 = vpop.f32.mrb[22].mxu0 }
0x14ea   : > { %v2363_v57 = vadd.f32 %v4053_v18, %v2362_v56  ;;  %v3086_v9 = vpop.f32.mrb[23].mxu0 }
0x14ec   : > { %2374 = vrot.lane.b32.xlu1 %v2363_v57, %s3690_s21  ;;  %v2366_v4 = vadd.f32 %v2363_v57, %v2293_v12 }
0x14ee   : > { %v2704_v58 = vmul.f32 -1.442695, %v2366_v4 }
0x14f0   : > { %3407 = vpow2.f32 %v2704_v58 }
0x14fa   : > { %v3408_v15 = vpop.eup %3407 }
0x14fb   : > { %v2370_v59 = vadd.f32 1.0, %v3408_v15 }
0x14fd   : > { %3409 = vrcp.f32 %v2370_v59 }
0x1507   : > { %v3410_v60 = vpop.eup %3409 }
0x1508   : > { %v2384_v24 = vsub.f32 1.0, %v3410_v60  ;;  %v2390_v2 = vmul.f32 %v3410_v60, %v2142_v50 }
0x155e   : > { %v2375_v61 = vpop.permute.xlu1 %2374 }
0x155f   : > { %v2377_v62 = vmul.f32 %v3410_v60, %v2375_v61 }
0x1561   : > { %2379 = vrot.lane.b32.xlu0 %v2377_v62, %s3690_s21 }
0x15d3   : > { %v2380_v63 = vpop.permute.xlu0 %2379 }
0x15d4   : > { %v2382_v18 = vadd.f32 %v2380_v63, %v2293_v12 }
0x15d6   : > { %3411 = vtanh.f32 %v2382_v18 }
0x15e0   : > { %v3412_v0 = vpop.eup %3411 }
0x15e1   : > { %2386 = vrot.lane.b32.xlu1 %v3412_v0, %s3691_s23 }
0x1653   : > { %v2387_v1 = vpop.permute.xlu1 %2386 }
0x1654   : > { %v2389_v3 = vmul.f32 %v2387_v1, %v2384_v24 }
0x1656   : > { %v2391_v6 = vadd.f32 %v2390_v2, %v2389_v3 }
0x1658   : > { %2393 = vrot.lane.b32.xlu0 %v2391_v6, %s3691_s23 }
0x16ca   : > { %v2394_v7 = vpop.permute.xlu0 %2393 }
0x16cb   : > { %2470 = vst.msk [vmem:[#allocation2] sm:$0xff] %vm468_vm2, %v2394_v7  ;;  %3096 = vmatmul.mubr.msk.f32.vlgmr.msra.gmra.mrb[22].mxu1 %vm468_vm2, %v2394_v7 }
0x179e   : > { %v2463_v8 = vpop.f32.mrb[22].mxu1 }
0x179f   : > { %v2464_v10 = vadd.f32 %v2463_v8, %v4096_v53  ;;  %v3097_v11 = vpop.f32.mrb[23].mxu1 }
0x17a1   : > { %2706 = vst [vmem:[%s4014_s5 + $0x38] sm:$0xff] %v2464_v10 }
0x17a2   : > { %3596 = shalt.err (!%p3593_p8)
}
0x17a3   : > { %s3597_s5 = scalar_lea.hbm %s4285_s16, 1024  ;;  %s3601_s14 = scalar_lea.hbm %s4345_s8, 3072 }
0x17a4   : > { %p3598_p1 = scmp.ne.s32.totalorder %s4285_s16, %s3597_s5  ;;  %p3602_p6 = scmp.lt.u32.totalorder %s4285_s16, %s4345_s8 }
0x17a5   : > { %p3603_p13 = scmp.lt.u32.totalorder %s3601_s14, %s3597_s5  ;;  %p3605_p2 = scmp.lt.u32.totalorder %s3597_s5, %s4285_s16 }
0x17a6   : > { %p3599_p3 = pnand %p3598_p1, %p4378_p4 }
0x17a7   : > { %p3604_p5 = por %p3603_p13, %p3602_p6 }
0x17a8   : > { %p3600_p10 = pneg %p3599_p3 }
0x17a9   : > { %p3606_p9 = por %p3605_p2, %p3604_p5 }
0x17ab   : > { %p3607_p11 = pnand %p3606_p9, %p3600_p10 }
0x17ad   : > { %3610 = shalt.err (!%p3607_p11)
}
0x17ae   : > { %s3694_s25 = smov 128   ;;  %s3695_s24 = smov 8  }
0x17af   : > { %3264 = dma.vmem_to_hbm [thread:$0]  (%p4378_p4), %s4287_s4, 1024, %s4285_s16, %s2472_s18, %s3694_s25, %s3694_s25, %s3695_s24  }
0x17b0 PF: > { %p3301_p12 = scmp.ge.s32.totalorder %s3677_s10, 2  ;;  %s2501_s1 = sand.u32 1, %s3657_s27  }
0x17b1   : > { %p4379_p0 = scmp.ne.s32.totalorder %s4374_s20, 0  ;;  %s2502_s11 = scalar_lea.sflag [#allocation5], %s2501_s1 }
0x17b3   : > { %p3287_p7 = pnand %p3301_p12, %p4379_p0 }
0x17b5   : > { %3652 = dma.done.wait (!%p3287_p7), %s2502_s11, 1024  }
0x17b6   : > { %3654 = vsyncadd (!%p3287_p7), %s2502_s11, 4294966272  ;;  %s27_s10 = sadd.s32 1, %s3677_s10   ;;  %s4380_s27 = smov %s3661_s28 }
0x17b7   : > { %p24_p8 = scmp.ge.s32.totalorder %s27_s10, 5   ;;  %s4381_s28 = smov %s3665_s29 }
0x17b8   : > { %s4382_s29 = smov %s3937_s17  ;;  %s4383_s30 = smov %s3673_s9 }
0x17b9   : > { %s4384_s9 = smov %s4386_s26  ;;  %26 = sbr.rel (!%p24_p8) target bundleno = 14 (0xe), region = 140 }
0x17c0   :  { %2507 = vsyncpa [#allocation4], 1 }
0x17c1   :  { %2509 = vsyncpa [#allocation4 + $0x1], 1 }
0x17c2   :  { %2510 = vsyncpa [#allocation7], 1 }
0x17c3   :  { %2511 = vsyncpa [#allocation10], 1 }
0x17c4   :  { %2512 = vsyncpa [#allocation13], 1 }
0x17c5   :  { %2513 = vsyncpa [#allocation5], 1 }
0x17c6   :  { %2515 = vsyncpa [#allocation5 + $0x1], 1 }

</bundles_post_ra>
